<compile_context>
chip_gen: v7x
topology: tpu7x:2x2x1
jax: 0.10.0
libtpu: 0.0.40
codegen_flags: <defaults>
</compile_context>

<pallas_src>
import functools

import jax
import jax.numpy as jnp
from jax.experimental import pallas as pl
from jax.experimental.pallas import tpu as pltpu

# ----------------------------- model dimensions ------------------------------
IN_CH = 3          # RGB input, like torchvision EfficientNet
STEM_C = 32        # stem output channels
EXPAND = 4         # MBConv expand ratio -> 128 expanded channels
SE_C = 8           # squeeze-excite bottleneck
HEAD_C = 128       # "in_features" of classifier[1] (1792 in real B4; shrunk here)
FC1_OUT = 64       # args.classifier.fc1_output_size
NUM_CLASSES = 8    # len(config.ACCEPTED_LABELS)
LOGIT_PAD = 128    # lane-dense logits store, sliced to NUM_CLASSES in JAX
BN_EPS = 1e-3


def _silu(v):
    # f32 activation math (v5e has no bf16 VPU/EUP); exp goes to the EUP slot.
    return v * (1.0 / (1.0 + jnp.exp(-v)))


# ------------------------------ Pallas kernels -------------------------------
def _fused_backbone_kernel(cols_ref, colid_ref, stemw_ref, stemb_ref,
                           expw_ref, expb_ref, dww_ref, dwb_ref,
                           se1w_ref, se1b_ref, se2w_ref, se2b_ref,
                           projw_ref, projb_ref, headw_ref, headb_ref,
                           feat_ref, *, wo):
    """Per-image fully-fused backbone: stem conv (im2col matmul) + BN + SiLU ->
    expand 1x1 -> depthwise 3x3 (roll+mask) -> SE -> project(+SE scale)+residual ->
    head 1x1 -> global average pool.  Nothing but the (1, HEAD_C) feature leaves VMEM."""
    m = cols_ref.shape[0]
    cexp = expw_ref.shape[-1]

    # stem: single (M, 9*Cin) @ (9*Cin, STEM_C) bf16 matmul, f32 accumulate, + BN + SiLU
    h = _silu(jnp.dot(cols_ref[...], stemw_ref[...],
                      preferred_element_type=jnp.float32) + stemb_ref[...])   # (M, 32)

    # MBConv expand 1x1 + BN + SiLU
    e = _silu(jnp.dot(h.astype(jnp.bfloat16), expw_ref[...],
                      preferred_element_type=jnp.float32) + expb_ref[...])    # (M, 128)

    # depthwise 3x3 / stride 1 / pad 1, computed in the flat (M, Cexp) layout.
    # W-shifts: XLU sublane rotations (pltpu.roll) + column boundary masks.
    # H-shifts: rotations by +-Wo rows (pure vreg moves when Wo % 8 == 0) + row masks.
    col = colid_ref[...]                                                      # (M, 1) i32
    ridx = jax.lax.broadcasted_iota(jnp.int32, (m, 1), 0)                     # flat row id
    e_wm1 = jnp.where(col != 0, pltpu.roll(e, shift=1, axis=0), 0.0)          # e[., w-1]
    e_wp1 = jnp.where(col != wo - 1, pltpu.roll(e, shift=m - 1, axis=0), 0.0) # e[., w+1]

    dw = dww_ref[...]                                                         # (9, Cexp) f32

    def _row(kh):  # weighted sum over the 3 taps of one kernel row (VPU MACs)
        k = 3 * kh
        return (e_wm1 * dw[k:k + 1, :] + e * dw[k + 1:k + 2, :]
                + e_wp1 * dw[k + 2:k + 3, :])

    r_above, r_mid, r_below = _row(0), _row(1), _row(2)
    dacc = (jnp.where(ridx >= wo, pltpu.roll(r_above, shift=wo, axis=0), 0.0)
            + r_mid
            + jnp.where(ridx < m - wo, pltpu.roll(r_below, shift=m - wo, axis=0), 0.0))
    d = _silu(dacc + dwb_ref[...])                                            # (M, 128) f32

    # squeeze-excite: GAP -> fc -> SiLU -> fc -> sigmoid (all stays in VMEM)
    pooled = jnp.mean(d, axis=0, keepdims=True)                               # (1, 128)
    s1 = _silu(jnp.dot(pooled.astype(jnp.bfloat16), se1w_ref[...],
                       preferred_element_type=jnp.float32) + se1b_ref[...])
    s2 = jnp.dot(s1.astype(jnp.bfloat16), se2w_ref[...],
                 preferred_element_type=jnp.float32) + se2b_ref[...]
    gate = 1.0 / (1.0 + jnp.exp(-s2))                                         # (1, 128)

    # SE scale folded into the project matmul input; BN bias + residual (stride 1, Cin==Cout)
    p = (jnp.dot((d * gate).astype(jnp.bfloat16), projw_ref[...],
                 preferred_element_type=jnp.float32) + projb_ref[...] + h)    # (M, 32)

    # head 1x1 conv + BN + SiLU, fused global average pool -> classifier features
    hd = _silu(jnp.dot(p.astype(jnp.bfloat16), headw_ref[...],
                       preferred_element_type=jnp.float32) + headb_ref[...])  # (M, 128)
    feat_ref[...] = jnp.mean(hd, axis=0, keepdims=True)                       # (1, 128) lane-dense


def _classifier_kernel(feat_ref, fc1w_ref, fc1b_ref, fc2w_ref, fc2b_ref, logits_ref):
    """Whole-batch classifier head: fc1 -> ReLU -> Dropout(eval) -> fc2 (lane-padded)."""
    f1 = jnp.dot(feat_ref[...].astype(jnp.bfloat16), fc1w_ref[...],
                 preferred_element_type=jnp.float32) + fc1b_ref[...]
    f1 = jnp.maximum(f1, 0.0)
    # TODO(synk): Dropout is identity in eval mode; training-mode mask not implemented.
    logits_ref[...] = jnp.dot(f1.astype(jnp.bfloat16), fc2w_ref[...],
                              preferred_element_type=jnp.float32) + fc2b_ref[...]


# --------------------------------- glue (JAX) --------------------------------
def im2col_3x3_s2(x):
    """NHWC, 3x3 kernel, stride 2, pad 1 -> (N, Ho*Wo, 9*C) patch matrix.

    Handles odd H/W like PyTorch (out = floor((H-1)/2)+1).  For stride 2 this is only a
    ~2.25x inflation of the tiny 3-channel input and feeds straight into the fused kernel.
    TODO(synk): could apply the 9 stem taps in-kernel to avoid this HBM round trip entirely.
    """
    N, H, W, C = x.shape
    Ho, Wo = (H + 1) // 2, (W + 1) // 2
    xp = jnp.pad(x, ((0, 0), (1, 1), (1, 1), (0, 0)))
    cols = []
    for kh in range(3):
        for kw in range(3):
            cols.append(xp[:, kh:kh + 2 * Ho - 1:2, kw:kw + 2 * Wo - 1:2, :])
    patches = jnp.concatenate(cols, axis=-1)          # (N, Ho, Wo, 9*C)
    return patches.reshape(N, Ho * Wo, 9 * C), (Ho, Wo)


def _bn_fold(c, key):
    k1, k2, k3, k4 = jax.random.split(key, 4)
    gamma = 1.0 + 0.1 * jax.random.normal(k1, (c,), jnp.float32)
    beta = 0.1 * jax.random.normal(k2, (c,), jnp.float32)
    mean = 0.1 * jax.random.normal(k3, (c,), jnp.float32)
    var = 1.0 + 0.1 * jax.random.uniform(k4, (c,), jnp.float32)
    scale = gamma / jnp.sqrt(var + BN_EPS)
    return scale, beta - mean * scale


def init_params(key):
    ks = jax.random.split(key, 16)
    cexp = STEM_C * EXPAND
    p = {}
    # stem: conv3x3 s2 (IN_CH -> STEM_C), eval-mode BN folded into weight/bias
    w = 0.1 * jax.random.normal(ks[0], (3, 3, IN_CH, STEM_C), jnp.float32)
    s, b = _bn_fold(STEM_C, ks[1])
    p["stem_w"] = (w * s).reshape(9 * IN_CH, STEM_C).astype(jnp.bfloat16)
    p["stem_b"] = b.reshape(1, STEM_C)
    # MBConv expand 1x1 (STEM_C -> cexp) + BN
    w = 0.1 * jax.random.normal(ks[2], (STEM_C, cexp), jnp.float32)
    s, b = _bn_fold(cexp, ks[3])
    p["exp_w"] = (w * s).astype(jnp.bfloat16)
    p["exp_b"] = b.reshape(1, cexp)
    # depthwise 3x3 (cexp) + BN -- stays f32 (VPU elementwise path)
    w = 0.1 * jax.random.normal(ks[4], (3, 3, cexp), jnp.float32)
    s, b = _bn_fold(cexp, ks[5])
    p["dw_w"] = (w * s).reshape(9, cexp)
    p["dw_b"] = b.reshape(1, cexp)
    # squeeze-excite FCs (with their own biases)
    p["se1_w"] = (0.1 * jax.random.normal(ks[6], (cexp, SE_C), jnp.float32)
                  ).astype(jnp.bfloat16)
    p["se1_b"] = 0.01 * jax.random.normal(ks[7], (1, SE_C), jnp.float32)
    p["se2_w"] = (0.1 * jax.random.normal(ks[8], (SE_C, cexp), jnp.float32)
                  ).astype(jnp.bfloat16)
    p["se2_b"] = 0.01 * jax.random.normal(ks[9], (1, cexp), jnp.float32)
    # project 1x1 (cexp -> STEM_C) + BN
    w = 0.1 * jax.random.normal(ks[10], (cexp, STEM_C), jnp.float32)
    s, b = _bn_fold(STEM_C, ks[11])
    p["proj_w"] = (w * s).astype(jnp.bfloat16)
    p["proj_b"] = b.reshape(1, STEM_C)
    # head 1x1 conv (STEM_C -> HEAD_C) + BN
    w = 0.1 * jax.random.normal(ks[12], (STEM_C, HEAD_C), jnp.float32)
    s, b = _bn_fold(HEAD_C, ks[13])
    p["head_w"] = (w * s).astype(jnp.bfloat16)
    p["head_b"] = b.reshape(1, HEAD_C)
    # classifier: fc1 -> ReLU -> Dropout -> fc2 (fc2 lane-padded to LOGIT_PAD)
    p["fc1_w"] = (0.1 * jax.random.normal(ks[14], (HEAD_C, FC1_OUT), jnp.float32)
                  ).astype(jnp.bfloat16)
    p["fc1_b"] = jnp.zeros((1, FC1_OUT), jnp.float32)
    w2 = 0.1 * jax.random.normal(ks[15], (FC1_OUT, NUM_CLASSES), jnp.float32)
    p["fc2_w"] = jnp.pad(w2, ((0, 0), (0, LOGIT_PAD - NUM_CLASSES))).astype(jnp.bfloat16)
    p["fc2_b"] = jnp.zeros((1, LOGIT_PAD), jnp.float32)
    return p


def efficientnet_forward(x_nchw, params):
    # NCHW (PyTorch convention) -> NHWC for the kernels
    x = jnp.transpose(x_nchw, (0, 2, 3, 1)).astype(jnp.float32)
    N, H, W, C = x.shape
    cexp = STEM_C * EXPAND
    cols, (Ho, Wo) = im2col_3x3_s2(x)
    cols = cols.astype(jnp.bfloat16)                  # bf16 MXU input
    M = Ho * Wo
    # per-pixel column index (shared across the batch) -> W boundary masks in-kernel
    col_ids = (jnp.arange(M, dtype=jnp.int32) % Wo).reshape(M, 1)

    weight_bytes = (2 * (9 * C * STEM_C + STEM_C * cexp + cexp * SE_C + SE_C * cexp
                         + cexp * STEM_C + STEM_C * HEAD_C)
                    + 4 * (9 * cexp + 3 * cexp + 2 * STEM_C + SE_C + HEAD_C + M))

    # --- fused backbone: one grid step per image, everything resident in VMEM ---
    feat = pl.pallas_call(
        functools.partial(_fused_backbone_kernel, wo=Wo),
        grid=(N,),
        in_specs=[
            pl.BlockSpec((None, M, 9 * C), lambda n: (n, 0, 0)),   # im2col patches
            pl.BlockSpec((M, 1), lambda n: (0, 0)),                # column ids (shared)
            pl.BlockSpec((9 * C, STEM_C), lambda n: (0, 0)),
            pl.BlockSpec((1, STEM_C), lambda n: (0, 0)),
            pl.BlockSpec((STEM_C, cexp), lambda n: (0, 0)),
            pl.BlockSpec((1, cexp), lambda n: (0, 0)),
            pl.BlockSpec((9, cexp), lambda n: (0, 0)),
            pl.BlockSpec((1, cexp), lambda n: (0, 0)),
            pl.BlockSpec((cexp, SE_C), lambda n: (0, 0)),
            pl.BlockSpec((1, SE_C), lambda n: (0, 0)),
            pl.BlockSpec((SE_C, cexp), lambda n: (0, 0)),
            pl.BlockSpec((1, cexp), lambda n: (0, 0)),
            pl.BlockSpec((cexp, STEM_C), lambda n: (0, 0)),
            pl.BlockSpec((1, STEM_C), lambda n: (0, 0)),
            pl.BlockSpec((STEM_C, HEAD_C), lambda n: (0, 0)),
            pl.BlockSpec((1, HEAD_C), lambda n: (0, 0)),
        ],
        out_specs=pl.BlockSpec((None, 1, HEAD_C), lambda n: (n, 0, 0)),
        out_shape=jax.ShapeDtypeStruct((N, 1, HEAD_C), jnp.float32),
        compiler_params=pltpu.CompilerParams(
            dimension_semantics=("parallel",),
            vmem_limit_bytes=32 * 1024 * 1024),
        cost_estimate=pl.CostEstimate(
            flops=2 * N * (M * (9 * C * STEM_C + STEM_C * cexp + 9 * cexp
                                + cexp * STEM_C + STEM_C * HEAD_C)
                           + 2 * cexp * SE_C),
            transcendentals=N * (M * (STEM_C + 2 * cexp + HEAD_C) + SE_C + cexp),
            bytes_accessed=N * (2 * M * 9 * C + 4 * HEAD_C) + weight_bytes),
    )(cols, col_ids,
      params["stem_w"], params["stem_b"], params["exp_w"], params["exp_b"],
      params["dw_w"], params["dw_b"], params["se1_w"], params["se1_b"],
      params["se2_w"], params["se2_b"], params["proj_w"], params["proj_b"],
      params["head_w"], params["head_b"])

    feat2 = feat.reshape(N, HEAD_C)                   # tiny (N, 128) f32 feature matrix

    # --- classifier head: one tiny call over the whole batch (no M=1 matmuls) ---
    logits_p = pl.pallas_call(
        _classifier_kernel,
        grid=(1,),
        in_specs=[
            pl.BlockSpec((N, HEAD_C), lambda i: (0, 0)),
            pl.BlockSpec((HEAD_C, FC1_OUT), lambda i: (0, 0)),
            pl.BlockSpec((1, FC1_OUT), lambda i: (0, 0)),
            pl.BlockSpec((FC1_OUT, LOGIT_PAD), lambda i: (0, 0)),
            pl.BlockSpec((1, LOGIT_PAD), lambda i: (0, 0)),
        ],
        out_specs=pl.BlockSpec((N, LOGIT_PAD), lambda i: (0, 0)),
        out_shape=jax.ShapeDtypeStruct((N, LOGIT_PAD), jnp.float32),
        compiler_params=pltpu.CompilerParams(dimension_semantics=("arbitrary",)),
        cost_estimate=pl.CostEstimate(
            flops=2 * N * (HEAD_C * FC1_OUT + FC1_OUT * LOGIT_PAD),
            transcendentals=0,
            bytes_accessed=(4 * N * (HEAD_C + LOGIT_PAD)
                            + 2 * (HEAD_C * FC1_OUT + FC1_OUT * LOGIT_PAD)
                            + 4 * (FC1_OUT + LOGIT_PAD))),
    )(feat2, params["fc1_w"], params["fc1_b"], params["fc2_w"], params["fc2_b"])

    return logits_p[:, :NUM_CLASSES]


if __name__ == "__main__":
    x = jax.random.normal(jax.random.PRNGKey(0), (2, IN_CH, 16, 16), jnp.float32)
    params = init_params(jax.random.PRNGKey(1))
    fwd = jax.jit(lambda inp: efficientnet_forward(inp, params))
    out = fwd(x)
    jax.block_until_ready(out)
    assert out.shape == (2, NUM_CLASSES)
    assert bool(jnp.all(jnp.isfinite(out)))
    print("KERNEL_OK")
</pallas_src>

<mosaic_0001>
module attributes {stable_mosaic.version = 11 : i64} {
  func.func @_fused_backbone_kernel(%arg0: i32, %arg1: memref<1x64x27xbf16, #tpu.memory_space<vmem>>, %arg2: memref<64x1xi32, #tpu.memory_space<vmem>>, %arg3: memref<27x32xbf16, #tpu.memory_space<vmem>>, %arg4: memref<1x32xf32, #tpu.memory_space<vmem>>, %arg5: memref<32x128xbf16, #tpu.memory_space<vmem>>, %arg6: memref<1x128xf32, #tpu.memory_space<vmem>>, %arg7: memref<9x128xf32, #tpu.memory_space<vmem>>, %arg8: memref<1x128xf32, #tpu.memory_space<vmem>>, %arg9: memref<128x8xbf16, #tpu.memory_space<vmem>>, %arg10: memref<1x8xf32, #tpu.memory_space<vmem>>, %arg11: memref<8x128xbf16, #tpu.memory_space<vmem>>, %arg12: memref<1x128xf32, #tpu.memory_space<vmem>>, %arg13: memref<128x32xbf16, #tpu.memory_space<vmem>>, %arg14: memref<1x32xf32, #tpu.memory_space<vmem>>, %arg15: memref<32x128xbf16, #tpu.memory_space<vmem>>, %arg16: memref<1x128xf32, #tpu.memory_space<vmem>>, %arg17: memref<1x1x128xf32, #tpu.memory_space<vmem>>) attributes {dimension_semantics = [#tpu.dimension_semantics<parallel>], iteration_bounds = array<i64: 2>, scalar_prefetch = 0 : i64, scratch_operands = 0 : i64, tpu.core_type = #tpu.core_type<tc>, window_params = [{transform_indices = @transform_0, window_bounds = array<i64: 1, 64, 27>}, {pipeline_mode = #tpu.pipeline_mode<synchronous>, transform_indices = @transform_1, window_bounds = array<i64: 64, 1>}, {pipeline_mode = #tpu.pipeline_mode<synchronous>, transform_indices = @transform_2, window_bounds = array<i64: 27, 32>}, {pipeline_mode = #tpu.pipeline_mode<synchronous>, transform_indices = @transform_3, window_bounds = array<i64: 1, 32>}, {pipeline_mode = #tpu.pipeline_mode<synchronous>, transform_indices = @transform_4, window_bounds = array<i64: 32, 128>}, {pipeline_mode = #tpu.pipeline_mode<synchronous>, transform_indices = @transform_5, window_bounds = array<i64: 1, 128>}, {pipeline_mode = #tpu.pipeline_mode<synchronous>, transform_indices = @transform_6, window_bounds = array<i64: 9, 128>}, {pipeline_mode = #tpu.pipeline_mode<synchronous>, transform_indices = @transform_7, window_bounds = array<i64: 1, 128>}, {pipeline_mode = #tpu.pipeline_mode<synchronous>, transform_indices = @transform_8, window_bounds = array<i64: 128, 8>}, {pipeline_mode = #tpu.pipeline_mode<synchronous>, transform_indices = @transform_9, window_bounds = array<i64: 1, 8>}, {pipeline_mode = #tpu.pipeline_mode<synchronous>, transform_indices = @transform_10, window_bounds = array<i64: 8, 128>}, {pipeline_mode = #tpu.pipeline_mode<synchronous>, transform_indices = @transform_11, window_bounds = array<i64: 1, 128>}, {pipeline_mode = #tpu.pipeline_mode<synchronous>, transform_indices = @transform_12, window_bounds = array<i64: 128, 32>}, {pipeline_mode = #tpu.pipeline_mode<synchronous>, transform_indices = @transform_13, window_bounds = array<i64: 1, 32>}, {pipeline_mode = #tpu.pipeline_mode<synchronous>, transform_indices = @transform_14, window_bounds = array<i64: 32, 128>}, {pipeline_mode = #tpu.pipeline_mode<synchronous>, transform_indices = @transform_15, window_bounds = array<i64: 1, 128>}, {transform_indices = @transform_16, window_bounds = array<i64: 1, 1, 128>}]} {
    %c0 = arith.constant 0 : index
    %c0_0 = arith.constant 0 : index
    %c0_1 = arith.constant 0 : index
    %0 = vector.load %arg1[%c0, %c0_0, %c0_1] : memref<1x64x27xbf16, #tpu.memory_space<vmem>>, vector<1x64x27xbf16>
    %1 = vector.shape_cast %0 : vector<1x64x27xbf16> to vector<64x27xbf16>
    %c0_2 = arith.constant 0 : index
    %c0_3 = arith.constant 0 : index
    %2 = vector.load %arg3[%c0_2, %c0_3] : memref<27x32xbf16, #tpu.memory_space<vmem>>, vector<27x32xbf16>
    %cst = arith.constant dense<0.000000e+00> : vector<64x32xf32>
    %3 = tpu.matmul %1, %2, %cst {dimension_numbers = #tpu.dot_dimension_numbers<[1], [0], [0], [1], [0, 0, 1, 1], [], []>} : vector<64x27xbf16>, vector<27x32xbf16>, vector<64x32xf32> -> vector<64x32xf32>
    %c0_4 = arith.constant 0 : index
    %c0_5 = arith.constant 0 : index
    %4 = vector.load %arg4[%c0_4, %c0_5] : memref<1x32xf32, #tpu.memory_space<vmem>>, vector<1x32xf32>
    %5 = vector.broadcast %4 : vector<1x32xf32> to vector<64x32xf32>
    %6 = arith.addf %3, %5 : vector<64x32xf32>
    %cst_6 = arith.constant 0.000000e+00 : f32
    %7 = vector.broadcast %cst_6 : f32 to vector<64x32xf32>
    %8 = arith.subf %7, %6 : vector<64x32xf32>
    %9 = math.exp %8 : vector<64x32xf32>
    %cst_7 = arith.constant 1.000000e+00 : f32
    %10 = vector.broadcast %cst_7 : f32 to vector<64x32xf32>
    %11 = arith.addf %10, %9 : vector<64x32xf32>
    %cst_8 = arith.constant 1.000000e+00 : f32
    %12 = vector.broadcast %cst_8 : f32 to vector<64x32xf32>
    %13 = arith.divf %12, %11 : vector<64x32xf32>
    %14 = arith.mulf %6, %13 : vector<64x32xf32>
    %15 = arith.truncf %14 : vector<64x32xf32> to vector<64x32xbf16>
    %c0_9 = arith.constant 0 : index
    %c0_10 = arith.constant 0 : index
    %16 = vector.load %arg5[%c0_9, %c0_10] : memref<32x128xbf16, #tpu.memory_space<vmem>>, vector<32x128xbf16>
    %cst_11 = arith.constant dense<0.000000e+00> : vector<64x128xf32>
    %17 = tpu.matmul %15, %16, %cst_11 {dimension_numbers = #tpu.dot_dimension_numbers<[1], [0], [0], [1], [0, 0, 1, 1], [], []>} : vector<64x32xbf16>, vector<32x128xbf16>, vector<64x128xf32> -> vector<64x128xf32>
    %c0_12 = arith.constant 0 : index
    %c0_13 = arith.constant 0 : index
    %18 = vector.load %arg6[%c0_12, %c0_13] : memref<1x128xf32, #tpu.memory_space<vmem>>, vector<1x128xf32>
    %19 = vector.broadcast %18 : vector<1x128xf32> to vector<64x128xf32>
    %20 = arith.addf %17, %19 : vector<64x128xf32>
    %cst_14 = arith.constant 0.000000e+00 : f32
    %21 = vector.broadcast %cst_14 : f32 to vector<64x128xf32>
    %22 = arith.subf %21, %20 : vector<64x128xf32>
    %23 = math.exp %22 : vector<64x128xf32>
    %cst_15 = arith.constant 1.000000e+00 : f32
    %24 = vector.broadcast %cst_15 : f32 to vector<64x128xf32>
    %25 = arith.addf %24, %23 : vector<64x128xf32>
    %cst_16 = arith.constant 1.000000e+00 : f32
    %26 = vector.broadcast %cst_16 : f32 to vector<64x128xf32>
    %27 = arith.divf %26, %25 : vector<64x128xf32>
    %28 = arith.mulf %20, %27 : vector<64x128xf32>
    %c0_17 = arith.constant 0 : index
    %c0_18 = arith.constant 0 : index
    %29 = vector.load %arg2[%c0_17, %c0_18] : memref<64x1xi32, #tpu.memory_space<vmem>>, vector<64x1xi32>
    %30 = tpu.iota {dimensions = array<i32: 0>} : vector<64x1xi32>
    %c0_i32 = arith.constant 0 : i32
    %31 = vector.broadcast %c0_i32 : i32 to vector<64x1xi32>
    %32 = arith.cmpi ne, %29, %31 : vector<64x1xi32>
    %c1_i32 = arith.constant 1 : i32
    %33 = tpu.dynamic_rotate %28 by %c1_i32 dim 0 : vector<64x128xf32>, i32 -> vector<64x128xf32>
    %cst_19 = arith.constant 0.000000e+00 : f32
    %34 = vector.shape_cast %32 : vector<64x1xi1> to vector<64x1xi1>
    %35 = vector.broadcast %34 : vector<64x1xi1> to vector<64x128xi1>
    %36 = vector.broadcast %cst_19 : f32 to vector<64x128xf32>
    %37 = arith.select %35, %33, %36 : vector<64x128xi1>, vector<64x128xf32>
    %c7_i32 = arith.constant 7 : i32
    %38 = vector.broadcast %c7_i32 : i32 to vector<64x1xi32>
    %39 = arith.cmpi ne, %29, %38 : vector<64x1xi32>
    %c63_i32 = arith.constant 63 : i32
    %40 = tpu.dynamic_rotate %28 by %c63_i32 dim 0 : vector<64x128xf32>, i32 -> vector<64x128xf32>
    %cst_20 = arith.constant 0.000000e+00 : f32
    %41 = vector.shape_cast %39 : vector<64x1xi1> to vector<64x1xi1>
    %42 = vector.broadcast %41 : vector<64x1xi1> to vector<64x128xi1>
    %43 = vector.broadcast %cst_20 : f32 to vector<64x128xf32>
    %44 = arith.select %42, %40, %43 : vector<64x128xi1>, vector<64x128xf32>
    %c0_21 = arith.constant 0 : index
    %c0_22 = arith.constant 0 : index
    %45 = vector.load %arg7[%c0_21, %c0_22] : memref<9x128xf32, #tpu.memory_space<vmem>>, vector<9x128xf32>
    %46 = vector.extract_strided_slice %45 {offsets = [0, 0], sizes = [1, 128], strides = [1, 1]} : vector<9x128xf32> to vector<1x128xf32>
    %47 = vector.broadcast %46 : vector<1x128xf32> to vector<64x128xf32>
    %48 = arith.mulf %37, %47 : vector<64x128xf32>
    %49 = vector.extract_strided_slice %45 {offsets = [1, 0], sizes = [1, 128], strides = [1, 1]} : vector<9x128xf32> to vector<1x128xf32>
    %50 = vector.broadcast %49 : vector<1x128xf32> to vector<64x128xf32>
    %51 = arith.mulf %28, %50 : vector<64x128xf32>
    %52 = arith.addf %48, %51 : vector<64x128xf32>
    %53 = vector.extract_strided_slice %45 {offsets = [2, 0], sizes = [1, 128], strides = [1, 1]} : vector<9x128xf32> to vector<1x128xf32>
    %54 = vector.broadcast %53 : vector<1x128xf32> to vector<64x128xf32>
    %55 = arith.mulf %44, %54 : vector<64x128xf32>
    %56 = arith.addf %52, %55 : vector<64x128xf32>
    %57 = vector.extract_strided_slice %45 {offsets = [3, 0], sizes = [1, 128], strides = [1, 1]} : vector<9x128xf32> to vector<1x128xf32>
    %58 = vector.broadcast %57 : vector<1x128xf32> to vector<64x128xf32>
    %59 = arith.mulf %37, %58 : vector<64x128xf32>
    %60 = vector.extract_strided_slice %45 {offsets = [4, 0], sizes = [1, 128], strides = [1, 1]} : vector<9x128xf32> to vector<1x128xf32>
    %61 = vector.broadcast %60 : vector<1x128xf32> to vector<64x128xf32>
    %62 = arith.mulf %28, %61 : vector<64x128xf32>
    %63 = arith.addf %59, %62 : vector<64x128xf32>
    %64 = vector.extract_strided_slice %45 {offsets = [5, 0], sizes = [1, 128], strides = [1, 1]} : vector<9x128xf32> to vector<1x128xf32>
    %65 = vector.broadcast %64 : vector<1x128xf32> to vector<64x128xf32>
    %66 = arith.mulf %44, %65 : vector<64x128xf32>
    %67 = arith.addf %63, %66 : vector<64x128xf32>
    %68 = vector.extract_strided_slice %45 {offsets = [6, 0], sizes = [1, 128], strides = [1, 1]} : vector<9x128xf32> to vector<1x128xf32>
    %69 = vector.broadcast %68 : vector<1x128xf32> to vector<64x128xf32>
    %70 = arith.mulf %37, %69 : vector<64x128xf32>
    %71 = vector.extract_strided_slice %45 {offsets = [7, 0], sizes = [1, 128], strides = [1, 1]} : vector<9x128xf32> to vector<1x128xf32>
    %72 = vector.broadcast %71 : vector<1x128xf32> to vector<64x128xf32>
    %73 = arith.mulf %28, %72 : vector<64x128xf32>
    %74 = arith.addf %70, %73 : vector<64x128xf32>
    %75 = vector.extract_strided_slice %45 {offsets = [8, 0], sizes = [1, 128], strides = [1, 1]} : vector<9x128xf32> to vector<1x128xf32>
    %76 = vector.broadcast %75 : vector<1x128xf32> to vector<64x128xf32>
    %77 = arith.mulf %44, %76 : vector<64x128xf32>
    %78 = arith.addf %74, %77 : vector<64x128xf32>
    %c8_i32 = arith.constant 8 : i32
    %79 = vector.broadcast %c8_i32 : i32 to vector<64x1xi32>
    %80 = arith.cmpi sge, %30, %79 : vector<64x1xi32>
    %c8_i32_23 = arith.constant 8 : i32
    %81 = tpu.dynamic_rotate %56 by %c8_i32_23 dim 0 : vector<64x128xf32>, i32 -> vector<64x128xf32>
    %cst_24 = arith.constant 0.000000e+00 : f32
    %82 = vector.shape_cast %80 : vector<64x1xi1> to vector<64x1xi1>
    %83 = vector.broadcast %82 : vector<64x1xi1> to vector<64x128xi1>
    %84 = vector.broadcast %cst_24 : f32 to vector<64x128xf32>
    %85 = arith.select %83, %81, %84 : vector<64x128xi1>, vector<64x128xf32>
    %86 = arith.addf %85, %67 : vector<64x128xf32>
    %c56_i32 = arith.constant 56 : i32
    %87 = vector.broadcast %c56_i32 : i32 to vector<64x1xi32>
    %88 = arith.cmpi slt, %30, %87 : vector<64x1xi32>
    %c56_i32_25 = arith.constant 56 : i32
    %89 = tpu.dynamic_rotate %78 by %c56_i32_25 dim 0 : vector<64x128xf32>, i32 -> vector<64x128xf32>
    %cst_26 = arith.constant 0.000000e+00 : f32
    %90 = vector.shape_cast %88 : vector<64x1xi1> to vector<64x1xi1>
    %91 = vector.broadcast %90 : vector<64x1xi1> to vector<64x128xi1>
    %92 = vector.broadcast %cst_26 : f32 to vector<64x128xf32>
    %93 = arith.select %91, %89, %92 : vector<64x128xi1>, vector<64x128xf32>
    %94 = arith.addf %86, %93 : vector<64x128xf32>
    %c0_27 = arith.constant 0 : index
    %c0_28 = arith.constant 0 : index
    %95 = vector.load %arg8[%c0_27, %c0_28] : memref<1x128xf32, #tpu.memory_space<vmem>>, vector<1x128xf32>
    %96 = vector.broadcast %95 : vector<1x128xf32> to vector<64x128xf32>
    %97 = arith.addf %94, %96 : vector<64x128xf32>
    %cst_29 = arith.constant 0.000000e+00 : f32
    %98 = vector.broadcast %cst_29 : f32 to vector<64x128xf32>
    %99 = arith.subf %98, %97 : vector<64x128xf32>
    %100 = math.exp %99 : vector<64x128xf32>
    %cst_30 = arith.constant 1.000000e+00 : f32
    %101 = vector.broadcast %cst_30 : f32 to vector<64x128xf32>
    %102 = arith.addf %101, %100 : vector<64x128xf32>
    %cst_31 = arith.constant 1.000000e+00 : f32
    %103 = vector.broadcast %cst_31 : f32 to vector<64x128xf32>
    %104 = arith.divf %103, %102 : vector<64x128xf32>
    %105 = arith.mulf %97, %104 : vector<64x128xf32>
    %cst_32 = arith.constant dense<0.000000e+00> : vector<128xf32>
    %106 = vector.multi_reduction <add>, %105, %cst_32 [0] : vector<64x128xf32> to vector<128xf32>
    %107 = vector.shape_cast %106 : vector<128xf32> to vector<1x128xf32>
    %cst_33 = arith.constant 6.400000e+01 : f32
    %108 = vector.broadcast %cst_33 : f32 to vector<1x128xf32>
    %109 = arith.divf %107, %108 : vector<1x128xf32>
    %110 = arith.truncf %109 : vector<1x128xf32> to vector<1x128xbf16>
    %c0_34 = arith.constant 0 : index
    %c0_35 = arith.constant 0 : index
    %111 = vector.load %arg9[%c0_34, %c0_35] : memref<128x8xbf16, #tpu.memory_space<vmem>>, vector<128x8xbf16>
    %cst_36 = arith.constant dense<0.000000e+00> : vector<1x8xf32>
    %112 = tpu.matmul %110, %111, %cst_36 {dimension_numbers = #tpu.dot_dimension_numbers<[1], [0], [0], [1], [0, 0, 1, 1], [], []>} : vector<1x128xbf16>, vector<128x8xbf16>, vector<1x8xf32> -> vector<1x8xf32>
    %c0_37 = arith.constant 0 : index
    %c0_38 = arith.constant 0 : index
    %113 = vector.load %arg10[%c0_37, %c0_38] : memref<1x8xf32, #tpu.memory_space<vmem>>, vector<1x8xf32>
    %114 = arith.addf %112, %113 : vector<1x8xf32>
    %cst_39 = arith.constant 0.000000e+00 : f32
    %115 = vector.broadcast %cst_39 : f32 to vector<1x8xf32>
    %116 = arith.subf %115, %114 : vector<1x8xf32>
    %117 = math.exp %116 : vector<1x8xf32>
    %cst_40 = arith.constant 1.000000e+00 : f32
    %118 = vector.broadcast %cst_40 : f32 to vector<1x8xf32>
    %119 = arith.addf %118, %117 : vector<1x8xf32>
    %cst_41 = arith.constant 1.000000e+00 : f32
    %120 = vector.broadcast %cst_41 : f32 to vector<1x8xf32>
    %121 = arith.divf %120, %119 : vector<1x8xf32>
    %122 = arith.mulf %114, %121 : vector<1x8xf32>
    %123 = arith.truncf %122 : vector<1x8xf32> to vector<1x8xbf16>
    %c0_42 = arith.constant 0 : index
    %c0_43 = arith.constant 0 : index
    %124 = vector.load %arg11[%c0_42, %c0_43] : memref<8x128xbf16, #tpu.memory_space<vmem>>, vector<8x128xbf16>
    %cst_44 = arith.constant dense<0.000000e+00> : vector<1x128xf32>
    %125 = tpu.matmul %123, %124, %cst_44 {dimension_numbers = #tpu.dot_dimension_numbers<[1], [0], [0], [1], [0, 0, 1, 1], [], []>} : vector<1x8xbf16>, vector<8x128xbf16>, vector<1x128xf32> -> vector<1x128xf32>
    %c0_45 = arith.constant 0 : index
    %c0_46 = arith.constant 0 : index
    %126 = vector.load %arg12[%c0_45, %c0_46] : memref<1x128xf32, #tpu.memory_space<vmem>>, vector<1x128xf32>
    %127 = arith.addf %125, %126 : vector<1x128xf32>
    %cst_47 = arith.constant 0.000000e+00 : f32
    %128 = vector.broadcast %cst_47 : f32 to vector<1x128xf32>
    %129 = arith.subf %128, %127 : vector<1x128xf32>
    %130 = math.exp %129 : vector<1x128xf32>
    %cst_48 = arith.constant 1.000000e+00 : f32
    %131 = vector.broadcast %cst_48 : f32 to vector<1x128xf32>
    %132 = arith.addf %131, %130 : vector<1x128xf32>
    %cst_49 = arith.constant 1.000000e+00 : f32
    %133 = vector.broadcast %cst_49 : f32 to vector<1x128xf32>
    %134 = arith.divf %133, %132 : vector<1x128xf32>
    %135 = vector.broadcast %134 : vector<1x128xf32> to vector<64x128xf32>
    %136 = arith.mulf %105, %135 : vector<64x128xf32>
    %137 = arith.truncf %136 : vector<64x128xf32> to vector<64x128xbf16>
    %c0_50 = arith.constant 0 : index
    %c0_51 = arith.constant 0 : index
    %138 = vector.load %arg13[%c0_50, %c0_51] : memref<128x32xbf16, #tpu.memory_space<vmem>>, vector<128x32xbf16>
    %cst_52 = arith.constant dense<0.000000e+00> : vector<64x32xf32>
    %139 = tpu.matmul %137, %138, %cst_52 {dimension_numbers = #tpu.dot_dimension_numbers<[1], [0], [0], [1], [0, 0, 1, 1], [], []>} : vector<64x128xbf16>, vector<128x32xbf16>, vector<64x32xf32> -> vector<64x32xf32>
    %c0_53 = arith.constant 0 : index
    %c0_54 = arith.constant 0 : index
    %140 = vector.load %arg14[%c0_53, %c0_54] : memref<1x32xf32, #tpu.memory_space<vmem>>, vector<1x32xf32>
    %141 = vector.broadcast %140 : vector<1x32xf32> to vector<64x32xf32>
    %142 = arith.addf %139, %141 : vector<64x32xf32>
    %143 = arith.addf %142, %14 : vector<64x32xf32>
    %144 = arith.truncf %143 : vector<64x32xf32> to vector<64x32xbf16>
    %c0_55 = arith.constant 0 : index
    %c0_56 = arith.constant 0 : index
    %145 = vector.load %arg15[%c0_55, %c0_56] : memref<32x128xbf16, #tpu.memory_space<vmem>>, vector<32x128xbf16>
    %cst_57 = arith.constant dense<0.000000e+00> : vector<64x128xf32>
    %146 = tpu.matmul %144, %145, %cst_57 {dimension_numbers = #tpu.dot_dimension_numbers<[1], [0], [0], [1], [0, 0, 1, 1], [], []>} : vector<64x32xbf16>, vector<32x128xbf16>, vector<64x128xf32> -> vector<64x128xf32>
    %c0_58 = arith.constant 0 : index
    %c0_59 = arith.constant 0 : index
    %147 = vector.load %arg16[%c0_58, %c0_59] : memref<1x128xf32, #tpu.memory_space<vmem>>, vector<1x128xf32>
    %148 = vector.broadcast %147 : vector<1x128xf32> to vector<64x128xf32>
    %149 = arith.addf %146, %148 : vector<64x128xf32>
    %cst_60 = arith.constant 0.000000e+00 : f32
    %150 = vector.broadcast %cst_60 : f32 to vector<64x128xf32>
    %151 = arith.subf %150, %149 : vector<64x128xf32>
    %152 = math.exp %151 : vector<64x128xf32>
    %cst_61 = arith.constant 1.000000e+00 : f32
    %153 = vector.broadcast %cst_61 : f32 to vector<64x128xf32>
    %154 = arith.addf %153, %152 : vector<64x128xf32>
    %cst_62 = arith.constant 1.000000e+00 : f32
    %155 = vector.broadcast %cst_62 : f32 to vector<64x128xf32>
    %156 = arith.divf %155, %154 : vector<64x128xf32>
    %157 = arith.mulf %149, %156 : vector<64x128xf32>
    %cst_63 = arith.constant dense<0.000000e+00> : vector<128xf32>
    %158 = vector.multi_reduction <add>, %157, %cst_63 [0] : vector<64x128xf32> to vector<128xf32>
    %159 = vector.shape_cast %158 : vector<128xf32> to vector<1x128xf32>
    %cst_64 = arith.constant 6.400000e+01 : f32
    %160 = vector.broadcast %cst_64 : f32 to vector<1x128xf32>
    %161 = arith.divf %159, %160 : vector<1x128xf32>
    %c0_65 = arith.constant 0 : index
    %c0_66 = arith.constant 0 : index
    %c0_67 = arith.constant 0 : index
    %162 = vector.load %arg17[%c0_65, %c0_66, %c0_67] : memref<1x1x128xf32, #tpu.memory_space<vmem>>, vector<1x1x128xf32>
    %163 = vector.shape_cast %162 : vector<1x1x128xf32> to vector<1x128xf32>
    %164 = vector.shape_cast %161 : vector<1x128xf32> to vector<1x1x128xf32>
    tpu.vector_store %arg17[%c0_65, %c0_66, %c0_67], %164 {strides = array<i32>} : memref<1x1x128xf32, #tpu.memory_space<vmem>>, vector<1x1x128xf32>,
    return
  }
  func.func @transform_0(%arg0: i32) -> (i32, i32, i32) {
    %c0_i32 = arith.constant 0 : i32
    %c0_i32_0 = arith.constant 0 : i32
    %c0_i32_1 = arith.constant 0 : i32
    return %arg0, %c0_i32, %c0_i32_0 : i32, i32, i32
  }
  func.func @transform_1(%arg0: i32) -> (i32, i32) {
    %c0_i32 = arith.constant 0 : i32
    %c0_i32_0 = arith.constant 0 : i32
    %c0_i32_1 = arith.constant 0 : i32
    return %c0_i32, %c0_i32_0 : i32, i32
  }
  func.func @transform_2(%arg0: i32) -> (i32, i32) {
    %c0_i32 = arith.constant 0 : i32
    %c0_i32_0 = arith.constant 0 : i32
    %c0_i32_1 = arith.constant 0 : i32
    return %c0_i32, %c0_i32_0 : i32, i32
  }
  func.func @transform_3(%arg0: i32) -> (i32, i32) {
    %c0_i32 = arith.constant 0 : i32
    %c0_i32_0 = arith.constant 0 : i32
    %c0_i32_1 = arith.constant 0 : i32
    return %c0_i32, %c0_i32_0 : i32, i32
  }
  func.func @transform_4(%arg0: i32) -> (i32, i32) {
    %c0_i32 = arith.constant 0 : i32
    %c0_i32_0 = arith.constant 0 : i32
    %c0_i32_1 = arith.constant 0 : i32
    return %c0_i32, %c0_i32_0 : i32, i32
  }
  func.func @transform_5(%arg0: i32) -> (i32, i32) {
    %c0_i32 = arith.constant 0 : i32
    %c0_i32_0 = arith.constant 0 : i32
    %c0_i32_1 = arith.constant 0 : i32
    return %c0_i32, %c0_i32_0 : i32, i32
  }
  func.func @transform_6(%arg0: i32) -> (i32, i32) {
    %c0_i32 = arith.constant 0 : i32
    %c0_i32_0 = arith.constant 0 : i32
    %c0_i32_1 = arith.constant 0 : i32
    return %c0_i32, %c0_i32_0 : i32, i32
  }
  func.func @transform_7(%arg0: i32) -> (i32, i32) {
    %c0_i32 = arith.constant 0 : i32
    %c0_i32_0 = arith.constant 0 : i32
    %c0_i32_1 = arith.constant 0 : i32
    return %c0_i32, %c0_i32_0 : i32, i32
  }
  func.func @transform_8(%arg0: i32) -> (i32, i32) {
    %c0_i32 = arith.constant 0 : i32
    %c0_i32_0 = arith.constant 0 : i32
    %c0_i32_1 = arith.constant 0 : i32
    return %c0_i32, %c0_i32_0 : i32, i32
  }
  func.func @transform_9(%arg0: i32) -> (i32, i32) {
    %c0_i32 = arith.constant 0 : i32
    %c0_i32_0 = arith.constant 0 : i32
    %c0_i32_1 = arith.constant 0 : i32
    return %c0_i32, %c0_i32_0 : i32, i32
  }
  func.func @transform_10(%arg0: i32) -> (i32, i32) {
    %c0_i32 = arith.constant 0 : i32
    %c0_i32_0 = arith.constant 0 : i32
    %c0_i32_1 = arith.constant 0 : i32
    return %c0_i32, %c0_i32_0 : i32, i32
  }
  func.func @transform_11(%arg0: i32) -> (i32, i32) {
    %c0_i32 = arith.constant 0 : i32
    %c0_i32_0 = arith.constant 0 : i32
    %c0_i32_1 = arith.constant 0 : i32
    return %c0_i32, %c0_i32_0 : i32, i32
  }
  func.func @transform_12(%arg0: i32) -> (i32, i32) {
    %c0_i32 = arith.constant 0 : i32
    %c0_i32_0 = arith.constant 0 : i32
    %c0_i32_1 = arith.constant 0 : i32
    return %c0_i32, %c0_i32_0 : i32, i32
  }
  func.func @transform_13(%arg0: i32) -> (i32, i32) {
    %c0_i32 = arith.constant 0 : i32
    %c0_i32_0 = arith.constant 0 : i32
    %c0_i32_1 = arith.constant 0 : i32
    return %c0_i32, %c0_i32_0 : i32, i32
  }
  func.func @transform_14(%arg0: i32) -> (i32, i32) {
    %c0_i32 = arith.constant 0 : i32
    %c0_i32_0 = arith.constant 0 : i32
    %c0_i32_1 = arith.constant 0 : i32
    return %c0_i32, %c0_i32_0 : i32, i32
  }
  func.func @transform_15(%arg0: i32) -> (i32, i32) {
    %c0_i32 = arith.constant 0 : i32
    %c0_i32_0 = arith.constant 0 : i32
    %c0_i32_1 = arith.constant 0 : i32
    return %c0_i32, %c0_i32_0 : i32, i32
  }
  func.func @transform_16(%arg0: i32) -> (i32, i32, i32) {
    %c0_i32 = arith.constant 0 : i32
    %c0_i32_0 = arith.constant 0 : i32
    %c0_i32_1 = arith.constant 0 : i32
    return %arg0, %c0_i32, %c0_i32_0 : i32, i32, i32
  }
}

module attributes {stable_mosaic.version = 11 : i64} {
  func.func @_classifier_kernel(%arg0: i32, %arg1: memref<2x128xf32, #tpu.memory_space<vmem>>, %arg2: memref<128x64xbf16, #tpu.memory_space<vmem>>, %arg3: memref<1x64xf32, #tpu.memory_space<vmem>>, %arg4: memref<64x128xbf16, #tpu.memory_space<vmem>>, %arg5: memref<1x128xf32, #tpu.memory_space<vmem>>, %arg6: memref<2x128xf32, #tpu.memory_space<vmem>>) attributes {dimension_semantics = [#tpu.dimension_semantics<arbitrary>], iteration_bounds = array<i64: 1>, scalar_prefetch = 0 : i64, scratch_operands = 0 : i64, tpu.core_type = #tpu.core_type<tc>, window_params = [{pipeline_mode = #tpu.pipeline_mode<synchronous>, transform_indices = @transform_0, window_bounds = array<i64: 2, 128>}, {pipeline_mode = #tpu.pipeline_mode<synchronous>, transform_indices = @transform_1, window_bounds = array<i64: 128, 64>}, {pipeline_mode = #tpu.pipeline_mode<synchronous>, transform_indices = @transform_2, window_bounds = array<i64: 1, 64>}, {pipeline_mode = #tpu.pipeline_mode<synchronous>, transform_indices = @transform_3, window_bounds = array<i64: 64, 128>}, {pipeline_mode = #tpu.pipeline_mode<synchronous>, transform_indices = @transform_4, window_bounds = array<i64: 1, 128>}, {pipeline_mode = #tpu.pipeline_mode<synchronous>, transform_indices = @transform_5, window_bounds = array<i64: 2, 128>}]} {
    %c0 = arith.constant 0 : index
    %c0_0 = arith.constant 0 : index
    %0 = vector.load %arg1[%c0, %c0_0] : memref<2x128xf32, #tpu.memory_space<vmem>>, vector<2x128xf32>
    %1 = arith.truncf %0 : vector<2x128xf32> to vector<2x128xbf16>
    %c0_1 = arith.constant 0 : index
    %c0_2 = arith.constant 0 : index
    %2 = vector.load %arg2[%c0_1, %c0_2] : memref<128x64xbf16, #tpu.memory_space<vmem>>, vector<128x64xbf16>
    %cst = arith.constant dense<0.000000e+00> : vector<2x64xf32>
    %3 = tpu.matmul %1, %2, %cst {dimension_numbers = #tpu.dot_dimension_numbers<[1], [0], [0], [1], [0, 0, 1, 1], [], []>} : vector<2x128xbf16>, vector<128x64xbf16>, vector<2x64xf32> -> vector<2x64xf32>
    %c0_3 = arith.constant 0 : index
    %c0_4 = arith.constant 0 : index
    %4 = vector.load %arg3[%c0_3, %c0_4] : memref<1x64xf32, #tpu.memory_space<vmem>>, vector<1x64xf32>
    %5 = vector.broadcast %4 : vector<1x64xf32> to vector<2x64xf32>
    %6 = arith.addf %3, %5 : vector<2x64xf32>
    %cst_5 = arith.constant 0.000000e+00 : f32
    %7 = vector.broadcast %cst_5 : f32 to vector<2x64xf32>
    %8 = arith.maximumf %6, %7 : vector<2x64xf32>
    %9 = arith.truncf %8 : vector<2x64xf32> to vector<2x64xbf16>
    %c0_6 = arith.constant 0 : index
    %c0_7 = arith.constant 0 : index
    %10 = vector.load %arg4[%c0_6, %c0_7] : memref<64x128xbf16, #tpu.memory_space<vmem>>, vector<64x128xbf16>
    %cst_8 = arith.constant dense<0.000000e+00> : vector<2x128xf32>
    %11 = tpu.matmul %9, %10, %cst_8 {dimension_numbers = #tpu.dot_dimension_numbers<[1], [0], [0], [1], [0, 0, 1, 1], [], []>} : vector<2x64xbf16>, vector<64x128xbf16>, vector<2x128xf32> -> vector<2x128xf32>
    %c0_9 = arith.constant 0 : index
    %c0_10 = arith.constant 0 : index
    %12 = vector.load %arg5[%c0_9, %c0_10] : memref<1x128xf32, #tpu.memory_space<vmem>>, vector<1x128xf32>
    %13 = vector.broadcast %12 : vector<1x128xf32> to vector<2x128xf32>
    %14 = arith.addf %11, %13 : vector<2x128xf32>
    %c0_11 = arith.constant 0 : index
    %c0_12 = arith.constant 0 : index
    %15 = vector.load %arg6[%c0_11, %c0_12] : memref<2x128xf32, #tpu.memory_space<vmem>>, vector<2x128xf32>
    tpu.vector_store %arg6[%c0_11, %c0_12], %14 {strides = array<i32>} : memref<2x128xf32, #tpu.memory_space<vmem>>, vector<2x128xf32>,
    return
  }
  func.func @transform_0(%arg0: i32) -> (i32, i32) {
    %c0_i32 = arith.constant 0 : i32
    %c0_i32_0 = arith.constant 0 : i32
    %c0_i32_1 = arith.constant 0 : i32
    return %c0_i32, %c0_i32_0 : i32, i32
  }
  func.func @transform_1(%arg0: i32) -> (i32, i32) {
    %c0_i32 = arith.constant 0 : i32
    %c0_i32_0 = arith.constant 0 : i32
    %c0_i32_1 = arith.constant 0 : i32
    return %c0_i32, %c0_i32_0 : i32, i32
  }
  func.func @transform_2(%arg0: i32) -> (i32, i32) {
    %c0_i32 = arith.constant 0 : i32
    %c0_i32_0 = arith.constant 0 : i32
    %c0_i32_1 = arith.constant 0 : i32
    return %c0_i32, %c0_i32_0 : i32, i32
  }
  func.func @transform_3(%arg0: i32) -> (i32, i32) {
    %c0_i32 = arith.constant 0 : i32
    %c0_i32_0 = arith.constant 0 : i32
    %c0_i32_1 = arith.constant 0 : i32
    return %c0_i32, %c0_i32_0 : i32, i32
  }
  func.func @transform_4(%arg0: i32) -> (i32, i32) {
    %c0_i32 = arith.constant 0 : i32
    %c0_i32_0 = arith.constant 0 : i32
    %c0_i32_1 = arith.constant 0 : i32
    return %c0_i32, %c0_i32_0 : i32, i32
  }
  func.func @transform_5(%arg0: i32) -> (i32, i32) {
    %c0_i32 = arith.constant 0 : i32
    %c0_i32_0 = arith.constant 0 : i32
    %c0_i32_1 = arith.constant 0 : i32
    return %c0_i32, %c0_i32_0 : i32, i32
  }
}

</mosaic_0001>

<bundles_post_ra>
// kernel: _lambda_.3
= control target key start
LH: loop header
LB: loop body
LE: loop exit
PB: predicated region body
PF: predicated region fallthrough
CT: control target
= control target key end

     0   :  { %v335_v1 = vmov 0.0   ;;  %vm336_vm0 = vmmov 0   ;;  %s425_s0 = inlined_call_operand.vmem [shape: f32[2,128], index: 0, kind: input, shape index: {}]   ;;  %s426_s1 = inlined_call_operand.vmem [shape: bf16[128,64], index: 1, kind: input, shape index: {}]   ;;  %s427_s2 = inlined_call_operand.vmem [shape: f32[1,64], index: 2, kind: input, shape index: {}]   ;;  %s428_s3 = inlined_call_operand.vmem [shape: bf16[64,128], index: 3, kind: input, shape index: {}]   ;;  %s429_s4 = inlined_call_operand.vmem [shape: f32[1,128], index: 4, kind: input, shape index: {}]   ;;  %s430_s5 = inlined_call_operand.hbm [shape: f32[2,128], index: 5, kind: output, shape index: {}]  }
   0x1   :  { %v299_v0 = vld [vmem:[%s426_s1] sm:$0xff]   ;;  %264 = vmatprep.subr.bf16.mxu0 %v335_v1  ;;  %284 = vmatprep.subr.bf16.mxu1 %v335_v1  ;;  %v300_v2 = vld [vmem:[%s426_s1 + $0x8] sm:$0xff]   ;;  %v301_v3 = vld [vmem:[%s426_s1 + $0x10] sm:$0xff]  }
   0x2   :  { %265 = vmatpush3.bf16.msra.mxu0 %v299_v0  ;;  %280 = vmatprep.mubr.msk.bf16.mxu0 %vm336_vm0, %v335_v1  ;;  %v307_v4 = vld [vmem:[%s428_s3] sm:$0xff]   ;;  %v302_v5 = vld [vmem:[%s426_s1 + $0x18] sm:$0xff]   ;;  %v308_v6 = vld [vmem:[%s428_s3 + $0x8] sm:$0xff]  }
   0x3   :  { %266 = vmatprep.subr.bf16.mxu0 %v335_v1  ;;  %292 = vmatprep.mubr.msk.bf16.mxu1 %vm336_vm0, %v335_v1 }
   0x4   :  { %285 = vmatpush3.bf16.msra.mxu1 %v307_v4 }
   0x5   :  { %286 = vmatprep.subr.bf16.mxu1 %v335_v1 }
   0x6   :  { %267 = vmatpush3.bf16.msra.mxu0 %v300_v2 }
   0x7   :  { %268 = vmatprep.subr.bf16.mxu0 %v335_v1 }
   0xa   :  { %269 = vmatpush3.bf16.msra.mxu0 %v301_v3 }
   0xb   :  { %270 = vmatprep.subr.bf16.mxu0 %v335_v1 }
   0xc   :  { %10 = vsyncpa [#allocation3], 0  ;;  %v303_v7 = vld [vmem:[%s426_s1 + $0x20] sm:$0xff]   ;;  %287 = vmatpush3.bf16.msra.mxu1 %v308_v6  ;;  %v304_v8 = vld [vmem:[%s426_s1 + $0x28] sm:$0xff]   ;;  %vm176_vm1 = vcmask 523264   ;;  %s337_s21 = smov [#allocation2]  }
   0xd   :  { %288 = vmatprep.subr.bf16.mxu1 %v335_v1  ;;  %v305_v9 = vld [vmem:[%s426_s1 + $0x30] sm:$0xff]   ;;  %v306_v10 = vld [vmem:[%s426_s1 + $0x38] sm:$0xff]   ;;  %v22_v11 = vld [vmem:[%s425_s0] sm:$0x3] }
   0xe   :  { %271 = vmatpush3.bf16.msra.mxu0 %v302_v5  ;;  %v23_v12 = vpack.c.bf16 %v22_v11, %v22_v11  ;;  %v309_v13 = vld [vmem:[%s428_s3 + $0x10] sm:$0xff]   ;;  %v310_v14 = vld [vmem:[%s428_s3 + $0x18] sm:$0xff]   ;;  %v235_v15 = vld [vmem:[%s427_s2] ss:$0 sm:$0xff]  ;;  %s227_s3 = sshll.u32 %s337_s21, 4  ;;  %s228_s3 = int_to_ptr.vmem [resolvable:$true] %s227_s3 }
   0xf   :  { %272 = vmatprep.subr.bf16.mxu0 %v335_v1  ;;  %v244_v23 = vld [vmem:[%s429_s4] ss:$0 sm:$0xff]  ;;  %s311_s2 = scalar_lea.vmem %s228_s3, 32  ;;  %p316_p1 = scmp.lt.s32.totalorder %s228_s3, %s228_s3 }
  0x10   :  { %289 = vmatpush3.bf16.msra.mxu1 %v309_v13  ;;  %p312_p0 = scmp.ne.s32.totalorder %s228_s3, %s311_s2  ;;  %p317_p2 = scmp.lt.s32.totalorder %s311_s2, %s311_s2 }
  0x11   :  { %290 = vmatprep.subr.bf16.mxu1 %v335_v1 }
  0x12   :  { %273 = vmatpush3.bf16.msra.mxu0 %v303_v7  ;;  %p318_p3 = por %p317_p2, %p316_p1 }
  0x13   :  { %274 = vmatprep.subr.bf16.mxu0 %v335_v1 }
  0x14   :  { %291 = vmatpush3.bf16.msra.mxu1 %v310_v14  ;;  %p319_p4 = pnand %p318_p3, %p312_p0 }
  0x16   :  { %275 = vmatpush3.bf16.msra.mxu0 %v304_v8 }
  0x17   :  { %276 = vmatprep.subr.bf16.mxu0 %v335_v1 }
  0x1a   :  { %277 = vmatpush3.bf16.msra.mxu0 %v305_v9 }
  0x1b   :  { %278 = vmatprep.subr.bf16.mxu0 %v335_v1 }
  0x1e   :  { %279 = vmatpush3.bf16.msra.mxu0 %v306_v10 }
  0x21   :  { %281 = vmatmul.mubr.bf16.vlgmr.msra.gmra.mrb[0].mxu0 %v23_v12 }
  0xf4   :  { %v129_v16 = vpop.f32.mrb[0].mxu0 }
  0xf5   :  { %v130_v17 = vadd.f32 %v235_v15, %v129_v16  ;;  %v282_v18 = vpop.f32.mrb[1].mxu0 }
  0xf6   :  { %v132_v19 = vpop.f32.mrb[2].mxu0 }
  0xf7   :  { %v135_v20 = vmax.f32 %v130_v17, 0.0  ;;  %v283_v21 = vpop.f32.mrb[3].mxu0 }
  0xf9   :  { %v136_v22 = vpack.c.bf16 %v135_v20, %v135_v20 }
  0xfb   :  { %293 = vmatmul.mubr.msk.bf16.vlgmr.msra.gmra.mrb[0].mxu1 %vm176_vm1, %v136_v22 }
 0x1ce   :  { %v214_v24 = vpop.f32.mrb[0].mxu1 }
 0x1cf   :  { %v215_v25 = vadd.f32 %v244_v23, %v214_v24  ;;  %v294_v26 = vpop.f32.mrb[1].mxu1 }
 0x1d0   :  { %v217_v27 = vpop.f32.mrb[2].mxu1 }
 0x1d1   :  { %220 = vst [vmem:[#allocation2] sm:$0x3] %v215_v25  ;;  %v295_v28 = vpop.f32.mrb[3].mxu1 }
 0x1d2   :  { %322 = shalt.err (!%p319_p4)
}
 0x1d3   :  { %s323_s4 = scalar_lea.hbm %s430_s5, 32 }
 0x1d4   :  { %p324_p5 = scmp.ne.s32.totalorder %s430_s5, %s323_s4  ;;  %p327_p6 = scmp.lt.u32.totalorder %s323_s4, %s430_s5 }
 0x1d6   :  { %p329_p7 = pnand %p327_p6, %p324_p5 }
 0x1d8   :  { %332 = shalt.err (!%p329_p7)
}
 0x1d9   :  { %230 = dma.vmem_to_hbm [thread:$0]  %s228_s3, 32, %s430_s5, [#allocation3]  }
 0x1da   :  { %333 = dma.done.wait [#allocation3], 32  }
 0x1db   :  { %334 = vsyncadd [#allocation3], 4294967264 }
 0x1dc   :  { %234 = vsyncpa [#allocation3], 1 }

// kernel: _lambda_.2
= control target key start
LH: loop header
LB: loop body
LE: loop exit
PB: predicated region body
PF: predicated region fallthrough
CT: control target
= control target key end

     0   :  { %s2365_s21 = smov 0   ;;  %s2910_s0 = inlined_call_operand.vmem [shape: bf16[2,64,27], index: 0, kind: input, shape index: {}]   ;;  %s2911_s1 = inlined_call_operand.vmem [shape: s32[64,1], index: 1, kind: input, shape index: {}]   ;;  %s2912_s2 = inlined_call_operand.vmem [shape: bf16[27,32], index: 2, kind: input, shape index: {}]   ;;  %s2913_s3 = inlined_call_operand.vmem [shape: f32[1,32], index: 3, kind: input, shape index: {}]   ;;  %s2914_s4 = inlined_call_operand.vmem [shape: bf16[32,128], index: 4, kind: input, shape index: {}]   ;;  %s2915_s5 = inlined_call_operand.vmem [shape: f32[1,128], index: 5, kind: input, shape index: {}]   ;;  %s2916_s6 = inlined_call_operand.vmem [shape: f32[9,128], index: 6, kind: input, shape index: {}]   ;;  %s2917_s7 = inlined_call_operand.vmem [shape: f32[1,128], index: 7, kind: input, shape index: {}]   ;;  %s2918_s8 = inlined_call_operand.vmem [shape: bf16[128,8], index: 8, kind: input, shape index: {}]   ;;  %s2919_s9 = inlined_call_operand.vmem [shape: f32[1,8], index: 9, kind: input, shape index: {}]   ;;  %s2920_s10 = inlined_call_operand.vmem [shape: bf16[8,128], index: 10, kind: input, shape index: {}]   ;;  %s2921_s11 = inlined_call_operand.vmem [shape: f32[1,128], index: 11, kind: input, shape index: {}]   ;;  %s2922_s12 = inlined_call_operand.vmem [shape: bf16[128,32], index: 12, kind: input, shape index: {}]   ;;  %s2923_s13 = inlined_call_operand.vmem [shape: f32[1,32], index: 13, kind: input, shape index: {}]   ;;  %s2924_s14 = inlined_call_operand.vmem [shape: bf16[32,128], index: 14, kind: input, shape index: {}]   ;;  %s2925_s15 = inlined_call_operand.vmem [shape: f32[1,128], index: 15, kind: input, shape index: {}]   ;;  %s2926_s16 = inlined_call_operand.vmem [shape: f32[2,1,128], index: 16, kind: output, shape index: {}]  }
   0x1   :  { %2930 = sst [smem:[#allocation2_spill]] %s2910_s0 }
   0x2 LB: > { %s1910_s22 = sadd.s32 4294967295, %s2274_s21   ;;  %p1914_p0 = scmp.ge.s32.totalorder %s2274_s21, 1  ;;  %s2274_s21 = sphi %s2365_s21, %s26_s21  }
   0x3   : > { %p462_p1 = scmp.lt.s32.totalorder %s2274_s21, 3 }
   0x5   : > { %p463_p2 = pnand %p1914_p0, %p462_p1 }
   0x6   : > { %v2106_v0 = vld [vmem:[%s2912_s2] sm:$0xff] (!%p463_p2)   ;;  %vm582_vm0 = vcmask (!%p463_p2), 1044480   ;;  %v2107_v1 = vld [vmem:[%s2912_s2 + $0x8] sm:$0x3f] (!%p463_p2)   ;;  %vm583_vm1 = vcmask (!%p463_p2), 1045504   ;;  %p510_p3 = scmp.lt.s32.totalorder (!%p463_p2), %s1910_s22, 1 }
   0x7   : > { %466 = sbr.rel (%p463_p2) target bundleno = 1619 (0x653), region = 84  ;;  %2006 = vmatprep.subr.bf16.mxu0 (!%p463_p2), %v2106_v0  ;;  %v2276_v2 = vmov (!%p463_p2), 65535   ;;  %vm569_vm2 = vcmask (!%p463_p2), 220160   ;;  %s2931_s30 = sld [smem:[#allocation2_spill]] (!%p463_p2)  ;;  %v2112_v10 = vld [vmem:[%s2914_s4] sm:$0xff] (!%p463_p2)   ;;  %v2113_v11 = vld [vmem:[%s2914_s4 + $0x8] sm:$0xff] (!%p463_p2)  }
   0x8   : > { %2007 = vmatpush3.bf16.msra.mxu0 (!%p463_p2), %v2106_v0  ;;  %v584_v3 = vsel (!%p463_p2), %vm582_vm0, 4294967295, %v2276_v2  ;;  %2018 = vmatprep.subr.bf16.mxu1 (!%p463_p2), %v2112_v10  ;;  %v871_v12 = vld [vmem:[%s2911_s1] sm:$0xff] (!%p463_p2)  ;;  %v873_v13 = vld [vmem:[%s2911_s1 + $0x10] sm:$0xff] (!%p463_p2)  ;;  %v872_v14 = vld [vmem:[%s2911_s1 + $0x8] sm:$0xff] (!%p463_p2)  ;;  %v2277_v15 = vmov (!%p463_p2), 0  }
   0x9   : > { %v585_v4 = vsel (!%p463_p2), %vm583_vm1, %v584_v3, 0  ;;  %2019 = vmatpush3.bf16.msra.mxu1 (!%p463_p2), %v2112_v10  ;;  %2104 = vset.pattern.permute.xlu0 (!%p463_p2), %v2277_v15  ;;  %vm888_vm3 = vcmp.ne.s32.totalorder (!%p463_p2), %v871_v12, 0  ;;  %vm890_vm4 = vcmp.ne.s32.totalorder (!%p463_p2), %v873_v13, 0  ;;  %vm889_vm5 = vcmp.ne.s32.totalorder (!%p463_p2), %v872_v14, 0  ;;  %v874_v18 = vld [vmem:[%s2911_s1 + $0x18] sm:$0xff] (!%p463_p2)  ;;  %v875_v21 = vld [vmem:[%s2911_s1 + $0x20] sm:$0xff] (!%p463_p2) }
   0xa   : > { %v587_v5 = vand.u32 (!%p463_p2), %v2107_v1, %v585_v4  ;;  %2020 = vmatprep.subr.bf16.mxu1 (!%p463_p2), %v2113_v11  ;;  %2105 = vset.pattern.permute.xlu1 (!%p463_p2), %v2277_v15  ;;  %vm961_vm6 = vcmp.ne.s32.totalorder (!%p463_p2), %v871_v12, 7  ;;  %v913_v16 = vsel (!%p463_p2), %vm888_vm3, 1, %v2277_v15  ;;  %v915_v17 = vsel (!%p463_p2), %vm890_vm4, 1, %v2277_v15  ;;  %v876_v24 = vld [vmem:[%s2911_s1 + $0x28] sm:$0xff] (!%p463_p2)  ;;  %v877_v27 = vld [vmem:[%s2911_s1 + $0x30] sm:$0xff] (!%p463_p2)  ;;  %v878_v30 = vld [vmem:[%s2911_s1 + $0x38] sm:$0xff] (!%p463_p2) }
   0xb   : > { %922 = vperm.xlu0 (!%p463_p2), %2104, %v913_v16   ;;  %928 = vperm.xlu1 (!%p463_p2), %2105, %v915_v17   ;;  %v914_v19 = vsel (!%p463_p2), %vm889_vm5, 1, %v2277_v15  ;;  %v986_v20 = vsel (!%p463_p2), %vm961_vm6, 1, %v2277_v15  ;;  %vm962_vm7 = vcmp.ne.s32.totalorder (!%p463_p2), %v872_v14, 7  ;;  %vm891_vm8 = vcmp.ne.s32.totalorder (!%p463_p2), %v874_v18, 0  ;;  %v1917_v37 = vld [vmem:[%s2913_s3] ss:$0 sm:$0xff] (!%p463_p2) }
   0xc   : > { %2008 = vmatprep.subr.bf16.mxu0 (!%p463_p2), %v587_v5  ;;  %v987_v22 = vsel (!%p463_p2), %vm962_vm7, 1, %v2277_v15  ;;  %v916_v23 = vsel (!%p463_p2), %vm891_vm8, 1, %v2277_v15  ;;  %vm963_vm9 = vcmp.ne.s32.totalorder (!%p463_p2), %v873_v13, 7  ;;  %vm892_vm10 = vcmp.ne.s32.totalorder (!%p463_p2), %v875_v21, 0 }
   0xd   : > { %2009 = vmatpush3.bf16.msra.mxu0 (!%p463_p2), %v587_v5  ;;  %2021 = vmatpush3.bf16.msra.mxu1 (!%p463_p2), %v2113_v11  ;;  %v988_v25 = vsel (!%p463_p2), %vm963_vm9, 1, %v2277_v15  ;;  %v917_v26 = vsel (!%p463_p2), %vm892_vm10, 1, %v2277_v15  ;;  %vm964_vm11 = vcmp.ne.s32.totalorder (!%p463_p2), %v874_v18, 7  ;;  %vm893_vm12 = vcmp.ne.s32.totalorder (!%p463_p2), %v876_v24, 0 }
   0xe   : > { %s2936_s22 = smov (!%p510_p3, %s1910_s22), 1  ;;  %v989_v28 = vsel %vm964_vm11, 1, %v2277_v15  ;;  %v918_v29 = vsel %vm893_vm12, 1, %v2277_v15  ;;  %vm965_vm13 = vcmp.ne.s32.totalorder %v875_v21, 7  ;;  %vm894_vm14 = vcmp.ne.s32.totalorder %v877_v27, 0 }
   0xf   : > { %s1964_s27 = sshll.u32 %s2936_s22, 5  ;;  %925 = vperm.xlu0 %2104, %v914_v19   ;;  %995 = vperm.xlu1 %2105, %v986_v20   ;;  %v990_v31 = vsel %vm965_vm13, 1, %v2277_v15  ;;  %v919_v32 = vsel %vm894_vm14, 1, %v2277_v15  ;;  %vm966_vm15 = vcmp.ne.s32.totalorder %v876_v24, 7  ;;  %vm895_vm0 = vcmp.ne.s32.totalorder %v878_v30, 0  ;;  %s517_s17 = scalar_lea.vmem %s2926_s16, %s2936_s22 }
  0x10   : > { %s514_s0 = scalar_lea.vmem %s2931_s30, %s1964_s27  ;;  %v991_v33 = vsel %vm966_vm15, 1, %v2277_v15  ;;  %v920_v34 = vsel %vm895_vm0, 1, %v2277_v15  ;;  %vm967_vm1 = vcmp.ne.s32.totalorder %v877_v27, 7  ;;  %vm737_vm3 = vcmask 261120  }
  0x11   : > { %v2108_v6 = vld [vmem:[%s514_s0] sm:$0xff]   ;;  %v2109_v7 = vld [vmem:[%s514_s0 + $0x8] sm:$0xff]   ;;  %v2110_v8 = vld [vmem:[%s514_s0 + $0x10] sm:$0xff]   ;;  %v992_v35 = vsel %vm967_vm1, 1, %v2277_v15  ;;  %vm2279_vm4 = vmmov 0  }
  0x12   : > { %2010 = vmatprep.mubr.msk.bf16.mxu0 %vm569_vm2, %v2108_v6  ;;  %v2111_v9 = vld [vmem:[%s514_s0 + $0x18] sm:$0xff]  }
  0x13   : > { %2011 = vmatmul.mubr.msk.bf16.vlgmr.msra.gmra.mrb[0].mxu0 %vm569_vm2, %v2109_v7  ;;  %998 = vperm.xlu0 %2104, %v987_v22  }
  0x14   : > { %2014 = vmatprep.mubr.msk.bf16.mxu0 %vm569_vm2, %v2110_v8  ;;  %931 = vperm.xlu1 %2105, %v916_v23  }
  0x17   : > { %1001 = vperm.xlu0 %2104, %v988_v25  }
  0x18   : > { %934 = vperm.xlu1 %2105, %v917_v26  }
  0x1b   : > { %2015 = vmatmul.mubr.msk.bf16.gmra.mrb[4].mxu0 %vm569_vm2, %v2111_v9  ;;  %1004 = vperm.xlu0 %2104, %v989_v28   ;;  %vm968_vm2 = vcmp.ne.s32.totalorder %v878_v30, 7 }
  0x1c   : > { %937 = vperm.xlu1 %2105, %v918_v29   ;;  %v993_v36 = vsel %vm968_vm2, 1, %v2277_v15 }
  0x1f   : > { %1007 = vperm.xlu0 %2104, %v990_v31  }
  0x20   : > { %940 = vperm.xlu1 %2105, %v919_v32  }
  0x23   : > { %1010 = vperm.xlu0 %2104, %v991_v33  }
  0x24   : > { %943 = vperm.xlu1 %2105, %v920_v34  }
  0x27   : > { %1013 = vperm.xlu0 %2104, %v992_v35  }
  0x28   : > { %1016 = vperm.xlu1 %2105, %v993_v36  }
  0xe6   : > { %v2012_v38 = vpop.f32.mrb[0].mxu0 }
  0xe7   : > { %v2418_v39 = vadd.f32 %v2012_v38, %v1917_v37  ;;  %v623_v40 = vpop.f32.mrb[1].mxu0 }
  0xe8   : > { %v2420_v41 = vadd.f32 %v1917_v37, %v623_v40  ;;  %v2013_v42 = vpop.f32.mrb[2].mxu0 }
  0xe9   : > { %v656_v43 = vsub.f32 0.0, %v2418_v39  ;;  %v635_v44 = vadd.f32 %v2013_v42, %v1917_v37  ;;  %v626_v45 = vpop.f32.mrb[3].mxu0  ;;  %v2114_v42 = vld [vmem:[%s2918_s8] sm:$0xff]  }
  0xea   : > { %v654_v46 = vsub.f32 0.0, %v2420_v41  ;;  %v627_v47 = vadd.f32 %v1917_v37, %v626_v45  ;;  %v1928_v45 = vld [vmem:[%s2915_s5] ss:$0 sm:$0xff] }
  0xeb   : > { %v666_v48 = vmul.f32 1.442695, %v656_v43  ;;  %v657_v49 = vsub.f32 0.0, %v635_v44  ;;  %v2278_v43 = vmov 0.0  }
  0xec   : > { %v662_v50 = vmul.f32 1.442695, %v654_v46  ;;  %v655_v51 = vsub.f32 0.0, %v627_v47  ;;  %2030 = vmatprep.subr.bf16.mxu0 %v2278_v43  ;;  %2050 = vmatprep.subr.bf16.mxu1 %v2278_v43  ;;  %v2116_v46 = vld [vmem:[%s2918_s8 + $0x10] sm:$0xff]  }
  0xed   : > { %2132 = vpow2.f32 %v666_v48  ;;  %v668_v52 = vmul.f32 1.442695, %v657_v49  ;;  %2031 = vmatpush3.bf16.msra.mxu0 %v2114_v42  ;;  %2046 = vmatprep.mubr.msk.bf16.mxu0 %vm2279_vm4, %v2278_v43 }
  0xee   : > { %2134 = vpow2.f32 %v662_v50  ;;  %v664_v53 = vmul.f32 1.442695, %v655_v51  ;;  %v2016_v54 = vpop.f32.mrb[4].mxu0  ;;  %2032 = vmatprep.subr.bf16.mxu0 %v2278_v43 }
  0xef   : > { %2136 = vpow2.f32 %v668_v52  ;;  %v2424_v55 = vadd.f32 %v2016_v54, %v1917_v37  ;;  %v639_v56 = vpop.f32.mrb[5].mxu0 }
  0xf0   : > { %2138 = vpow2.f32 %v664_v53  ;;  %v640_v57 = vadd.f32 %v1917_v37, %v639_v56  ;;  %v2017_v58 = vpop.f32.mrb[6].mxu0 }
  0xf1   : > { %v660_v59 = vsub.f32 0.0, %v2424_v55  ;;  %v651_v60 = vadd.f32 %v2017_v58, %v1917_v37  ;;  %v642_v61 = vpop.f32.mrb[7].mxu0 }
  0xf2   : > { %v658_v62 = vsub.f32 0.0, %v640_v57  ;;  %v643_v63 = vadd.f32 %v1917_v37, %v642_v61 }
  0xf3   : > { %v674_v0 = vmul.f32 1.442695, %v660_v59  ;;  %v661_v1 = vsub.f32 0.0, %v651_v60 }
  0xf4   : > { %v670_v2 = vmul.f32 1.442695, %v658_v62  ;;  %v659_v3 = vsub.f32 0.0, %v643_v63 }
  0xf5   : > { %2140 = vpow2.f32 %v674_v0  ;;  %v676_v4 = vmul.f32 1.442695, %v661_v1 }
  0xf6   : > { %2142 = vpow2.f32 %v670_v2  ;;  %v672_v5 = vmul.f32 1.442695, %v659_v3 }
  0xf7   : > { %v2133_v6 = vpop.eup %2132  ;;  %2144 = vpow2.f32 %v676_v4  ;;  %v2119_v4 = vld [vmem:[%s2918_s8 + $0x28] sm:$0xff]  }
  0xf8   : > { %v2135_v7 = vpop.eup %2134  ;;  %v680_v8 = vadd.f32 1.0, %v2133_v6  ;;  %2146 = vpow2.f32 %v672_v5 }
  0xf9   : > { %v2137_v9 = vpop.eup %2136  ;;  %v678_v10 = vadd.f32 1.0, %v2135_v7 }
  0xfa   : > { %v2139_v11 = vpop.eup %2138  ;;  %2148 = vrcp.f32 %v680_v8  ;;  %v681_v12 = vadd.f32 1.0, %v2137_v9 }
  0xfb   : > { %2150 = vrcp.f32 %v678_v10  ;;  %v679_v13 = vadd.f32 1.0, %v2139_v11 }
  0xfc   : > { %2152 = vrcp.f32 %v681_v12 }
  0xfd   : > { %2154 = vrcp.f32 %v679_v13 }
  0xff   : > { %v2141_v14 = vpop.eup %2140 }
 0x100   : > { %v2143_v15 = vpop.eup %2142  ;;  %v684_v16 = vadd.f32 1.0, %v2141_v14  ;;  %v2120_v14 = vld [vmem:[%s2918_s8 + $0x30] sm:$0xff]  }
 0x101   : > { %v2145_v17 = vpop.eup %2144  ;;  %v682_v18 = vadd.f32 1.0, %v2143_v15 }
 0x102   : > { %v2147_v19 = vpop.eup %2146  ;;  %2156 = vrcp.f32 %v684_v16  ;;  %v685_v20 = vadd.f32 1.0, %v2145_v17 }
 0x103   : > { %2158 = vrcp.f32 %v682_v18  ;;  %v683_v21 = vadd.f32 1.0, %v2147_v19 }
 0x104   : > { %v2149_v22 = vpop.eup %2148  ;;  %2160 = vrcp.f32 %v685_v20  ;;  %v879_v20 = vlaneseq }
 0x105   : > { %v2151_v23 = vpop.eup %2150  ;;  %2162 = vrcp.f32 %v683_v21  ;;  %v2435_v29 = vmul.f32 %v2149_v22, %v2418_v39  ;;  %v2121_v21 = vld [vmem:[%s2918_s8 + $0x38] sm:$0xff]  }
 0x106   : > { %v2153_v24 = vpop.eup %2152  ;;  %v2430_v27 = vmul.f32 %v2151_v23, %v2420_v41 }
 0x107   : > { %v2155_v25 = vpop.eup %2154  ;;  %v2427_v26 = vmul.f32 %v2153_v24, %v635_v44  ;;  %v2115_v44 = vld [vmem:[%s2918_s8 + $0x8] sm:$0xff]  }
 0x108   : > { %v2432_v28 = vmul.f32 %v2155_v25, %v627_v47  ;;  %2033 = vmatpush3.bf16.msra.mxu0 %v2115_v44  ;;  %v2520_v25 = vpop.permute.xlu0 %922 }
 0x109   : > { %v711_v31 = vpack.c.bf16 %v2427_v26, %v2435_v29  ;;  %2034 = vmatprep.subr.bf16.mxu0 %v2278_v43 }
 0x10a   : > { %v710_v30 = vpack.c.bf16 %v2432_v28, %v2430_v27 }
 0x10c   : > { %v2157_v32 = vpop.eup %2156  ;;  %2022 = vmatprep.mubr.msk.bf16.mxu1 %vm737_vm3, %v710_v30  ;;  %2035 = vmatpush3.bf16.msra.mxu0 %v2116_v46  ;;  %v2527_v42 = vpop.permute.xlu0 %925 }
 0x10d   : > { %v2159_v33 = vpop.eup %2158  ;;  %2023 = vmatmul.mubr.msk.bf16.vlgmr.msra.gmra.mrb[0].mxu1 %vm737_vm3, %v711_v31  ;;  %v2450_v39 = vmul.f32 %v2157_v32, %v2424_v55  ;;  %2036 = vmatprep.subr.bf16.mxu0 %v2278_v43  ;;  %v2117_v55 = vld [vmem:[%s2918_s8 + $0x18] sm:$0xff]   ;;  %v2522_v31 = vpop.permute.xlu1 %928  ;;  %vm946_vm5 = vcmp.eq.s32.totalorder %v2527_v42, 1 }
 0x10e   : > { %v2161_v34 = vpop.eup %2160  ;;  %v2445_v37 = vmul.f32 %v2159_v33, %v640_v57  ;;  %vm947_vm10 = vcmp.eq.s32.totalorder %v2522_v31, 1 }
 0x10f   : > { %v2163_v35 = vpop.eup %2162  ;;  %v2443_v36 = vmul.f32 %v2161_v34, %v651_v60  ;;  %v2118_v60 = vld [vmem:[%s2918_s8 + $0x20] sm:$0xff]   ;;  %v2524_v34 = vshrl.u32 %v879_v20, 7 }
 0x110   : > { %v2447_v38 = vmul.f32 %v2163_v35, %v643_v63  ;;  %2037 = vmatpush3.bf16.msra.mxu0 %v2117_v55 }
 0x111   : > { %v713_v41 = vpack.c.bf16 %v2443_v36, %v2450_v39  ;;  %2038 = vmatprep.subr.bf16.mxu0 %v2278_v43  ;;  %v1102_v46 = vsub.s32 4, %v2524_v34  ;;  %v2927_v55 = vsub.s32 0, %v2524_v34  ;;  %vm904_vm6 = vcmp.lt.s32.totalorder %v2524_v34, 1 }
 0x112   : > { %v712_v40 = vpack.c.bf16 %v2447_v38, %v2445_v37  ;;  %vm977_vm9 = vcmp.lt.s32.totalorder %v2524_v34, 7 }
 0x114   : > { %2026 = vmatprep.mubr.msk.bf16.mxu1 %vm737_vm3, %v712_v40  ;;  %2039 = vmatpush3.bf16.msra.mxu0 %v2118_v60  ;;  %v1070_v60 = vsub.s32 2, %v2524_v34 }
 0x115   : > { %2027 = vmatmul.mubr.msk.bf16.gmra.mrb[4].mxu1 %vm737_vm3, %v713_v41  ;;  %2040 = vmatprep.subr.bf16.mxu0 %v2278_v43  ;;  %v1050_v41 = vsub.s32 1, %v2524_v34 }
 0x116   : > { %2052 = vmatprep.mubr.msk.bf16.mxu1 %vm2279_vm4, %v2278_v43  ;;  %vm945_vm4 = vcmp.eq.s32.totalorder %v2520_v25, 1 }
 0x118   : > { %2041 = vmatpush3.bf16.msra.mxu0 %v2119_v4 }
 0x119   : > { %2042 = vmatprep.subr.bf16.mxu0 %v2278_v43 }
 0x11c   : > { %2043 = vmatpush3.bf16.msra.mxu0 %v2120_v14 }
 0x11d   : > { %2044 = vmatprep.subr.bf16.mxu0 %v2278_v43  ;;  %v2529_v43 = vpop.permute.xlu1 %995 }
 0x11e   : > { %vm1018_vm15 = vcmp.eq.s32.totalorder %v2529_v43, 1  ;;  %v2721_v43 = vld [vmem:[%s2917_s7] ss:$0 sm:$0xff] }
 0x120   : > { %2045 = vmatpush3.bf16.msra.mxu0 %v2121_v21 }
 0x1e0   : > { %v2024_v47 = vpop.f32.mrb[0].mxu1 }
 0x1e1   : > { %v2474_v48 = vadd.f32 %v2024_v47, %v1928_v45  ;;  %v784_v49 = vpop.f32.mrb[1].mxu1 }
 0x1e2   : > { %v2476_v50 = vadd.f32 %v1928_v45, %v784_v49  ;;  %v2025_v51 = vpop.f32.mrb[2].mxu1 }
 0x1e3   : > { %v817_v52 = vsub.f32 0.0, %v2474_v48  ;;  %v2480_v53 = vadd.f32 %v2025_v51, %v1928_v45  ;;  %v787_v54 = vpop.f32.mrb[3].mxu1  ;;  %v1154_v51 = vsub.s32 7, %v2524_v34 }
 0x1e4   : > { %v815_v56 = vsub.f32 0.0, %v2476_v50  ;;  %v2486_v57 = vadd.f32 %v1928_v45, %v787_v54 }
 0x1e5   : > { %v827_v58 = vmul.f32 1.442695, %v817_v52  ;;  %v818_v59 = vsub.f32 0.0, %v2480_v53 }
 0x1e6   : > { %v823_v61 = vmul.f32 1.442695, %v815_v56  ;;  %v816_v62 = vsub.f32 0.0, %v2486_v57  ;;  %v1090_v56 = vsub.s32 3, %v2524_v34 }
 0x1e7   : > { %2164 = vpow2.f32 %v827_v58  ;;  %v829_v63 = vmul.f32 1.442695, %v818_v59  ;;  %v1142_v59 = vsub.s32 6, %v2524_v34 }
 0x1e8   : > { %2166 = vpow2.f32 %v823_v61  ;;  %v825_v0 = vmul.f32 1.442695, %v816_v62  ;;  %v2028_v1 = vpop.f32.mrb[4].mxu1 }
 0x1e9   : > { %2168 = vpow2.f32 %v829_v63  ;;  %v2496_v2 = vadd.f32 %v2028_v1, %v1928_v45  ;;  %v800_v3 = vpop.f32.mrb[5].mxu1 }
 0x1ea   : > { %2170 = vpow2.f32 %v825_v0  ;;  %v2501_v5 = vadd.f32 %v1928_v45, %v800_v3  ;;  %v2029_v6 = vpop.f32.mrb[6].mxu1  ;;  %v1122_v0 = vsub.s32 5, %v2524_v34 }
 0x1eb   : > { %v821_v7 = vsub.f32 0.0, %v2496_v2  ;;  %v2505_v8 = vadd.f32 %v2029_v6, %v1928_v45  ;;  %v803_v9 = vpop.f32.mrb[7].mxu1 }
 0x1ec   : > { %v819_v10 = vsub.f32 0.0, %v2501_v5  ;;  %v2508_v11 = vadd.f32 %v1928_v45, %v803_v9  ;;  %v1034_v45 = vld [vmem:[%s2916_s6] sm:$0xff]  ;;  %v932_v9 = vpop.permute.xlu1 %931 }
 0x1ed   : > { %v835_v12 = vmul.f32 1.442695, %v821_v7  ;;  %v822_v13 = vsub.f32 0.0, %v2505_v8  ;;  %v2538_v58 = vrot.slane %v1034_v45, %v1050_v41  ;;  %v2542_v63 = vrot.slane %v1034_v45, %v1102_v46  ;;  %v999_v7 = vpop.permute.xlu0 %998 }
 0x1ee   : > { %v831_v15 = vmul.f32 1.442695, %v819_v10  ;;  %v820_v16 = vsub.f32 0.0, %v2508_v11  ;;  %v2550_v6 = vrot.slane %v1034_v45, %v1154_v51  ;;  %v2559_v14 = vrot.slane %v1034_v45, %v1090_v56 }
 0x1ef   : > { %2172 = vpow2.f32 %v835_v12  ;;  %v837_v17 = vmul.f32 1.442695, %v822_v13  ;;  %v2557_v13 = vrot.slane %v1034_v45, %v2927_v55  ;;  %vm1019_vm7 = vcmp.eq.s32.totalorder %v999_v7, 1 }
 0x1f0   : > { %2174 = vpow2.f32 %v831_v15  ;;  %v833_v18 = vmul.f32 1.442695, %v820_v16  ;;  %vm948_vm8 = vcmp.eq.s32.totalorder %v932_v9, 1  ;;  %v2564_v16 = vrot.slane %v1034_v45, %v1142_v59 }
 0x1f1   : > { %v2165_v19 = vpop.eup %2164  ;;  %2176 = vpow2.f32 %v837_v17  ;;  %v2567_v17 = vrot.slane %v1034_v45, %v1070_v60  ;;  %v1002_v41 = vpop.permute.xlu0 %1001 }
 0x1f2   : > { %v2167_v22 = vpop.eup %2166  ;;  %v841_v23 = vadd.f32 1.0, %v2165_v19  ;;  %2178 = vpow2.f32 %v833_v18  ;;  %v2570_v18 = vrot.slane %v1034_v45, %v1122_v0  ;;  %vm1020_vm11 = vcmp.eq.s32.totalorder %v1002_v41, 1 }
 0x1f3   : > { %v2169_v24 = vpop.eup %2168  ;;  %v839_v30 = vadd.f32 1.0, %v2167_v22 }
 0x1f4   : > { %v2171_v32 = vpop.eup %2170  ;;  %2180 = vrcp.f32 %v841_v23  ;;  %v842_v33 = vadd.f32 1.0, %v2169_v24 }
 0x1f5   : > { %2182 = vrcp.f32 %v839_v30  ;;  %v840_v35 = vadd.f32 1.0, %v2171_v32 }
 0x1f6   : > { %2184 = vrcp.f32 %v842_v33 }
 0x1f7   : > { %2186 = vrcp.f32 %v840_v35 }
 0x1f9   : > { %v2173_v40 = vpop.eup %2172 }
 0x1fa   : > { %v2175_v44 = vpop.eup %2174  ;;  %v845_v47 = vadd.f32 1.0, %v2173_v40 }
 0x1fb   : > { %v2177_v49 = vpop.eup %2176  ;;  %v843_v52 = vadd.f32 1.0, %v2175_v44 }
 0x1fc   : > { %v2179_v54 = vpop.eup %2178  ;;  %2188 = vrcp.f32 %v845_v47  ;;  %v846_v1 = vadd.f32 1.0, %v2177_v49 }
 0x1fd   : > { %v844_v61 = vadd.f32 1.0, %v2179_v54  ;;  %2190 = vrcp.f32 %v843_v52 }
 0x1fe   : > { %v2181_v62 = vpop.eup %2180 }
 0x1ff   : > { %v2183_v3 = vpop.eup %2182  ;;  %v2547_v4 = vmul.f32 %v2181_v62, %v2474_v48  ;;  %2192 = vrcp.f32 %v844_v61  ;;  %v2621_v62 = vld [vmem:[%s2916_s6 + $0x8] ss:$0 sm:$0xff] }
 0x200   : > { %v2185_v10 = vpop.eup %2184  ;;  %v2553_v12 = vmul.f32 %v2183_v3, %v2476_v50  ;;  %2194 = vrcp.f32 %v846_v1  ;;  %v935_v1 = vpop.permute.xlu1 %934 }
 0x201   : > { %v2187_v48 = vpop.eup %2186  ;;  %v2562_v15 = vmul.f32 %v2185_v10, %v2480_v53  ;;  %v971_v19 = vrot.slane %v2547_v4, 1  ;;  %v898_v53 = vrot.slane %v2547_v4, 7  ;;  %v2581_v22 = vmul.f32 %v2538_v58, %v2547_v4 }
 0x202   : > { %v864_v50 = vmul.f32 %v2187_v48, %v2486_v57  ;;  %v2575_v20 = vmul.f32 %v2538_v58, %v2553_v12  ;;  %v2929_v23 = vrot.slane %v2553_v12, 7  ;;  %v2928_v24 = vrot.slane %v2553_v12, 1 }
 0x203   : > { %v899_v21 = vrot.slane %v2562_v15, 7  ;;  %v1055_v30 = vmul.f32 %v2538_v58, %v2562_v15  ;;  %v1107_v40 = vmul.f32 %v2542_v63, %v2562_v15  ;;  %v1159_v56 = vmul.f32 %v2550_v6, %v2562_v15 }
 0x204   : > { %v897_v57 = vrot.slane %v864_v50, 7  ;;  %v1053_v32 = vmul.f32 %v2538_v58, %v864_v50  ;;  %v970_v33 = vrot.slane %v864_v50, 1  ;;  %v1105_v46 = vmul.f32 %v2542_v63, %v864_v50 }
 0x205   : > { %v909_v35 = vsel %vm904_vm6, %v898_v53, %v899_v21  ;;  %v1157_v47 = vmul.f32 %v2550_v6, %v864_v50  ;;  %v972_v50 = vrot.slane %v2562_v15, 1  ;;  %vm949_vm12 = vcmp.eq.s32.totalorder %v935_v1, 1 }
 0x206   : > { %v2189_v44 = vpop.eup %2188  ;;  %v911_v45 = vsel %vm904_vm6, %v2929_v23, %v897_v57  ;;  %v910_v49 = vsel %vm904_vm6, %v897_v57, %v898_v53  ;;  %v2609_v52 = vsel %vm977_vm9, %v2928_v24, %v970_v33  ;;  %v983_v54 = vsel %vm977_vm9, %v970_v33, %v971_v19 }
 0x207   : > { %v954_v51 = vsel %vm946_vm5, %v911_v45, 0.0  ;;  %v2191_v59 = vpop.eup %2190  ;;  %v956_v0 = vsel %vm948_vm8, %v909_v35, 0.0  ;;  %v1027_v10 = vsel %vm1019_vm7, %v983_v54, 0.0  ;;  %v2626_v48 = vmul.f32 %v2189_v44, %v2496_v2  ;;  %v1005_v44 = vpop.permute.xlu0 %1004 }
 0x208   : > { %v1041_v60 = vmul.f32 %v2557_v13, %v954_v51  ;;  %v1093_v61 = vmul.f32 %v2559_v14, %v954_v51  ;;  %v1145_v42 = vmul.f32 %v2564_v16, %v954_v51  ;;  %v1106_v53 = vmul.f32 %v2542_v63, %v2547_v4 }
 0x209   : > { %v2193_v3 = vpop.eup %2192  ;;  %v1073_v51 = vmul.f32 %v2567_v17, %v1027_v10  ;;  %v1125_v9 = vmul.f32 %v2570_v18, %v1027_v10  ;;  %v1177_v35 = vmul.f32 %v2621_v62, %v1027_v10  ;;  %v1043_v7 = vmul.f32 %v2557_v13, %v956_v0 }
 0x20a   : > { %v1061_v57 = vadd.f32 %v1053_v32, %v1041_v60  ;;  %v1113_v33 = vadd.f32 %v1105_v46, %v1093_v61  ;;  %v1165_v45 = vadd.f32 %v1157_v47, %v1145_v42  ;;  %v1095_v2 = vmul.f32 %v2559_v14, %v956_v0  ;;  %v2195_v54 = vpop.eup %2194 }
 0x20b   : > { %v2637_v24 = vmul.f32 %v2191_v59, %v2501_v5  ;;  %v1147_v32 = vmul.f32 %v2564_v16, %v956_v0  ;;  %v2641_v46 = vmul.f32 %v2193_v3, %v2508_v11  ;;  %vm1021_vm13 = vcmp.eq.s32.totalorder %v1005_v44, 1  ;;  %v938_v0 = vpop.permute.xlu1 %937 }
 0x20c   : > { %v1081_v55 = vadd.f32 %v1073_v51, %v1061_v57  ;;  %v2643_v47 = vadd.f32 %v1125_v9, %v1113_v33  ;;  %v2645_v60 = vadd.f32 %v1177_v35, %v1165_v45  ;;  %v1063_v61 = vadd.f32 %v1055_v30, %v1043_v7  ;;  %v1008_v45 = vpop.permute.xlu0 %1007 }
 0x20d   : > { %v1115_v42 = vadd.f32 %v1107_v40, %v1095_v2  ;;  %v1167_v10 = vadd.f32 %v1159_v56, %v1147_v32  ;;  %v955_v23 = vsel %vm947_vm10, %v910_v49, 0.0  ;;  %v982_v5 = vsel %vm977_vm9, %v971_v19, %v972_v50 }
 0x20e   : > { %v1158_v59 = vmul.f32 %v2550_v6, %v2547_v4  ;;  %v1028_v11 = vsel %vm1020_vm11, %v982_v5, 0.0  ;;  %v1042_v3 = vmul.f32 %v2557_v13, %v955_v23  ;;  %v1094_v57 = vmul.f32 %v2559_v14, %v955_v23 }
 0x20f   : > { %v1146_v30 = vmul.f32 %v2564_v16, %v955_v23  ;;  %vm950_vm14 = vcmp.eq.s32.totalorder %v938_v0, 1  ;;  %v1074_v40 = vmul.f32 %v2567_v17, %v1028_v11  ;;  %v1126_v31 = vmul.f32 %v2570_v18, %v1028_v11 }
 0x210   : > { %v1178_v49 = vmul.f32 %v2621_v62, %v1028_v11  ;;  %v900_v19 = vrot.slane %v2637_v24, 7  ;;  %v1062_v4 = vadd.f32 %v2581_v22, %v1042_v3  ;;  %v1114_v56 = vadd.f32 %v1106_v53, %v1094_v57 }
 0x211   : > { %v1166_v41 = vadd.f32 %v1158_v59, %v1146_v30  ;;  %v1056_v33 = vmul.f32 %v2538_v58, %v2637_v24  ;;  %v1108_v51 = vmul.f32 %v2542_v63, %v2637_v24  ;;  %v1160_v9 = vmul.f32 %v2550_v6, %v2637_v24  ;;  %v941_v59 = vpop.permute.xlu1 %940 }
 0x212   : > { %v908_v23 = vsel %vm904_vm6, %v899_v21, %v900_v19  ;;  %v973_v35 = vrot.slane %v2637_v24, 1  ;;  %v1082_v22 = vadd.f32 %v1074_v40, %v1062_v4  ;;  %v1134_v53 = vadd.f32 %v1126_v31, %v1114_v56 }
 0x213   : > { %v2674_v7 = vadd.f32 %v1178_v49, %v1166_v41  ;;  %v957_v2 = vsel %vm949_vm12, %v908_v23, 0.0  ;;  %vm1022_vm0 = vcmp.eq.s32.totalorder %v1008_v45, 1  ;;  %v2683_v24 = vmul.f32 %v2195_v54, %v2505_v8 }
 0x214   : > { %v1044_v15 = vmul.f32 %v2557_v13, %v957_v2  ;;  %v1096_v21 = vmul.f32 %v2559_v14, %v957_v2  ;;  %v1148_v32 = vmul.f32 %v2564_v16, %v957_v2  ;;  %v981_v5 = vsel %vm977_vm9, %v972_v50, %v973_v35 }
 0x215   : > { %v1226_v11 = vadd.f32 %v1134_v53, %v1081_v55  ;;  %v1029_v3 = vsel %vm1021_vm13, %v981_v5, 0.0  ;;  %v901_v1 = vrot.slane %v2641_v46, 7  ;;  %vm951_vm1 = vcmp.eq.s32.totalorder %v941_v59, 1  ;;  %v1011_v55 = vpop.permute.xlu0 %1010 }
 0x216   : > { %v1064_v57 = vadd.f32 %v1056_v33, %v1044_v15  ;;  %v1116_v30 = vadd.f32 %v1108_v51, %v1096_v21  ;;  %v1168_v40 = vadd.f32 %v1160_v9, %v1148_v32  ;;  %v1075_v31 = vmul.f32 %v2567_v17, %v1029_v3 }
 0x217   : > { %v1127_v49 = vmul.f32 %v2570_v18, %v1029_v3  ;;  %v1179_v4 = vmul.f32 %v2621_v62, %v1029_v3  ;;  %v907_v50 = vsel %vm904_vm6, %v900_v19, %v901_v1  ;;  %v1057_v8 = vmul.f32 %v2538_v58, %v2641_v46  ;;  %v944_v3 = vpop.permute.xlu1 %943 }
 0x218   : > { %v1083_v44 = vadd.f32 %v1075_v31, %v1063_v61  ;;  %v958_v54 = vsel %vm950_vm14, %v907_v50, 0.0  ;;  %v1109_v56 = vmul.f32 %v2542_v63, %v2641_v46  ;;  %v974_v41 = vrot.slane %v2641_v46, 1 }
 0x219   : > { %vm1023_vm2 = vcmp.eq.s32.totalorder %v1011_v55, 1  ;;  %v1135_v33 = vadd.f32 %v1127_v49, %v1115_v42  ;;  %v1187_v23 = vadd.f32 %v1179_v4, %v1167_v10  ;;  %v1045_v51 = vmul.f32 %v2557_v13, %v958_v54 }
 0x21a   : > { %v1097_v9 = vmul.f32 %v2559_v14, %v958_v54  ;;  %v1149_v19 = vmul.f32 %v2564_v16, %v958_v54  ;;  %v1161_v53 = vmul.f32 %v2550_v6, %v2641_v46  ;;  %v980_v61 = vsel %vm977_vm9, %v973_v35, %v974_v41 }
 0x21b   : > { %v902_v0 = vrot.slane %v2626_v48, 7  ;;  %v1227_v2 = vadd.f32 %v1135_v33, %v1082_v22  ;;  %v1266_v15 = vadd.f32 %v1226_v11, %v1187_v23  ;;  %v1065_v21 = vadd.f32 %v1057_v8, %v1045_v51 }
 0x21c   : > { %v1117_v32 = vadd.f32 %v1109_v56, %v1097_v9  ;;  %v1026_v42 = vsel %vm1018_vm15, %v2609_v52, 0.0  ;;  %v1169_v10 = vadd.f32 %v1161_v53, %v1149_v19  ;;  %v1030_v5 = vsel %vm1022_vm0, %v980_v61, 0.0 }
 0x21d   : > { %v906_v46 = vsel %vm904_vm6, %v901_v1, %v902_v0  ;;  %v1076_v35 = vmul.f32 %v2567_v17, %v1030_v5  ;;  %v1128_v22 = vmul.f32 %v2570_v18, %v1030_v5  ;;  %v1180_v11 = vmul.f32 %v2621_v62, %v1030_v5 }
 0x21e   : > { %v1058_v31 = vmul.f32 %v2538_v58, %v2626_v48  ;;  %vm952_vm5 = vcmp.eq.s32.totalorder %v944_v3, 1  ;;  %v959_v52 = vsel %vm951_vm1, %v906_v46, 0.0  ;;  %v1110_v45 = vmul.f32 %v2542_v63, %v2626_v48 }
 0x21f   : > { %v1162_v1 = vmul.f32 %v2550_v6, %v2626_v48  ;;  %v975_v49 = vrot.slane %v2626_v48, 1  ;;  %v1084_v4 = vadd.f32 %v1076_v35, %v1064_v57  ;;  %v1136_v50 = vadd.f32 %v1128_v22, %v1116_v30 }
 0x220   : > { %v1188_v8 = vadd.f32 %v1180_v11, %v1168_v40  ;;  %v903_v58 = vrot.slane %v2683_v24, 7  ;;  %v1046_v54 = vmul.f32 %v2557_v13, %v959_v52  ;;  %v1098_v56 = vmul.f32 %v2559_v14, %v959_v52 }
 0x221   : > { %v1150_v59 = vmul.f32 %v2564_v16, %v959_v52  ;;  %v979_v33 = vsel %vm977_vm9, %v974_v41, %v975_v49  ;;  %v2736_v23 = vadd.f32 %v2721_v43, %v1266_v15  ;;  %v1228_v51 = vadd.f32 %v1136_v50, %v1083_v44 }
 0x222   : > { %v1267_v9 = vadd.f32 %v1227_v2, %v1188_v8  ;;  %v1031_v48 = vsel %vm1023_vm2, %v979_v33, 0.0  ;;  %v1066_v57 = vadd.f32 %v1058_v31, %v1046_v54  ;;  %v1118_v30 = vadd.f32 %v1110_v45, %v1098_v56  ;;  %v1014_v45 = vpop.permute.xlu0 %1013 }
 0x223   : > { %v1170_v40 = vadd.f32 %v1162_v1, %v1150_v59  ;;  %v1077_v19 = vmul.f32 %v2567_v17, %v1031_v48  ;;  %v1104_v53 = vmul.f32 %v2542_v63, %v2553_v12  ;;  %v1072_v61 = vmul.f32 %v2567_v17, %v1026_v42 }
 0x224   : > { %v1129_v5 = vmul.f32 %v2570_v18, %v1031_v48  ;;  %v1181_v41 = vmul.f32 %v2621_v62, %v1031_v48  ;;  %v1124_v15 = vmul.f32 %v2570_v18, %v1026_v42  ;;  %v905_v55 = vsel %vm904_vm6, %v902_v0, %v903_v58 }
 0x225   : > { %v1085_v44 = vadd.f32 %v1077_v19, %v1065_v21  ;;  %v2932_v2 = vrot.slane %v2553_v12, 7  ;;  %v1289_v35 = vsub.f32 0.0, %v2736_v23  ;;  %v960_v52 = vsel %vm952_vm5, %v905_v55, 0.0 }
 0x226   : > { %v1137_v22 = vadd.f32 %v1129_v5, %v1117_v32  ;;  %v1189_v11 = vadd.f32 %v1181_v41, %v1169_v10  ;;  %v1111_v0 = vmul.f32 %v2542_v63, %v2683_v24  ;;  %v1099_v8 = vmul.f32 %v2559_v14, %v960_v52 }
 0x227   : > { %v912_v46 = vsel %vm904_vm6, %v903_v58, %v2932_v2  ;;  %v1163_v32 = vmul.f32 %v2550_v6, %v2683_v24  ;;  %v1151_v3 = vmul.f32 %v2564_v16, %v960_v52  ;;  %v1017_v58 = vpop.permute.xlu1 %1016  ;;  %v2767_v54 = vadd.f32 %v2721_v43, %v1267_v9 }
 0x228   : > { %v953_v31 = vsel %vm945_vm4, %v912_v46, 0.0  ;;  %v1229_v1 = vadd.f32 %v1137_v22, %v1084_v4  ;;  %v1268_v50 = vadd.f32 %v1228_v51, %v1189_v11  ;;  %v1119_v4 = vadd.f32 %v1111_v0, %v1099_v8 }
 0x229   : > { %v1040_v42 = vmul.f32 %v2557_v13, %v953_v31  ;;  %v1092_v21 = vmul.f32 %v2559_v14, %v953_v31  ;;  %v976_v13 = vrot.slane %v2683_v24, 1  ;;  %vm1024_vm6 = vcmp.eq.s32.totalorder %v1014_v45, 1 }
 0x22a   : > { %v2770_v63 = vadd.f32 %v2721_v43, %v1268_v50  ;;  %v1171_v59 = vadd.f32 %v1163_v32, %v1151_v3  ;;  %v2933_v16 = vrot.slane %v2553_v12, 1  ;;  %vm1025_vm7 = vcmp.eq.s32.totalorder %v1017_v58, 1 }
 0x22b   : > { %v1060_v25 = vadd.f32 %v2575_v20, %v1040_v42  ;;  %v1112_v10 = vadd.f32 %v1104_v53, %v1092_v21  ;;  %v978_v6 = vsel %vm977_vm9, %v975_v49, %v976_v13  ;;  %v1299_v33 = vmul.f32 1.442695, %v1289_v35 }
 0x22c   : > { %v1032_v20 = vsel %vm1024_vm6, %v978_v6, 0.0  ;;  %v985_v24 = vsel %vm977_vm9, %v976_v13, %v2933_v16  ;;  %v1290_v19 = vsub.f32 0.0, %v2767_v54  ;;  %v1291_v12 = vsub.f32 0.0, %v2770_v63 }
 0x22d   : > { %v1080_v14 = vadd.f32 %v1072_v61, %v1060_v25  ;;  %v1132_v56 = vadd.f32 %v1124_v15, %v1112_v10  ;;  %v1078_v48 = vmul.f32 %v2567_v17, %v1032_v20  ;;  %v1130_v53 = vmul.f32 %v2570_v18, %v1032_v20 }
 0x22e   : > { %v1182_v49 = vmul.f32 %v2621_v62, %v1032_v20  ;;  %v1033_v61 = vsel %vm1025_vm7, %v985_v24, 0.0  ;;  %2196 = vpow2.f32 %v1299_v33  ;;  %v1301_v35 = vmul.f32 1.442695, %v1290_v19 }
 0x22f   : > { %v1225_v51 = vadd.f32 %v2643_v47, %v1080_v14  ;;  %v1264_v9 = vadd.f32 %v2645_v60, %v1132_v56  ;;  %v1086_v15 = vadd.f32 %v1078_v48, %v1066_v57  ;;  %v1138_v47 = vadd.f32 %v1130_v53, %v1118_v30 }
 0x230   : > { %v1190_v55 = vadd.f32 %v1182_v49, %v1170_v40  ;;  %v1131_v60 = vmul.f32 %v2570_v18, %v1033_v61  ;;  %v1183_v46 = vmul.f32 %v2621_v62, %v1033_v61  ;;  %vm1478_vm8 = vcmask 1043456  }
 0x231   : > { %v1265_v5 = vadd.f32 %v1225_v51, %v2674_v7  ;;  %v2787_v41 = vadd.f32 %v2721_v43, %v1264_v9  ;;  %v1230_v22 = vadd.f32 %v1138_v47, %v1085_v44  ;;  %v1303_v7 = vmul.f32 1.442695, %v1291_v12 }
 0x232   : > { %v1269_v11 = vadd.f32 %v1229_v1, %v1190_v55  ;;  %v1139_v31 = vadd.f32 %v1131_v60, %v1119_v4  ;;  %v1191_v21 = vadd.f32 %v1183_v46, %v1171_v59  ;;  %vm1474_vm9 = vcmask 64512  }
 0x233   : > { %v1280_v17 = vadd.f32 %v2721_v43, %v1265_v5  ;;  %v1287_v2 = vsub.f32 0.0, %v2787_v41 }
 0x234   : > { %v1284_v57 = vadd.f32 %v2721_v43, %v1269_v11  ;;  %v1231_v30 = vadd.f32 %v1139_v31, %v1086_v15  ;;  %v1270_v40 = vadd.f32 %v1230_v22, %v1191_v21 }
 0x235   : > { %v1288_v52 = vsub.f32 0.0, %v1280_v17  ;;  %v1295_v42 = vmul.f32 1.442695, %v1287_v2 }
 0x236   : > { %v1292_v0 = vsub.f32 0.0, %v1284_v57  ;;  %v1286_v45 = vadd.f32 %v2721_v43, %v1231_v30  ;;  %v1285_v62 = vadd.f32 %v2721_v43, %v1270_v40 }
 0x237   : > { %2198 = vpow2.f32 %v1295_v42  ;;  %v1297_v18 = vmul.f32 1.442695, %v1288_v52 }
 0x238   : > { %2200 = vpow2.f32 %v1301_v35  ;;  %v1305_v44 = vmul.f32 1.442695, %v1292_v0  ;;  %v1294_v1 = vsub.f32 0.0, %v1286_v45  ;;  %v1293_v50 = vsub.f32 0.0, %v1285_v62  ;;  %v2197_v32 = vpop.eup %2196  ;;  %v1472_v0 = vld [vmem:[%s2920_s10] sm:$0xf] }
 0x239   : > { %2202 = vpow2.f32 %v1303_v7  ;;  %v1313_v13 = vadd.f32 1.0, %v2197_v32 }
 0x23a   : > { %2204 = vpow2.f32 %v1297_v18  ;;  %v1309_v8 = vmul.f32 1.442695, %v1294_v1  ;;  %v1307_v25 = vmul.f32 1.442695, %v1293_v50 }
 0x23b   : > { %2206 = vpow2.f32 %v1305_v44 }
 0x23c   : > { %2208 = vpow2.f32 %v1309_v8 }
 0x23d   : > { %2210 = vpow2.f32 %v1307_v25 }
 0x241   : > { %v2199_v10 = vpop.eup %2198 }
 0x242   : > { %v2201_v3 = vpop.eup %2200  ;;  %v1311_v58 = vadd.f32 1.0, %v2199_v10 }
 0x243   : > { %v2203_v4 = vpop.eup %2202  ;;  %v1314_v56 = vadd.f32 1.0, %v2201_v3 }
 0x244   : > { %v2205_v14 = vpop.eup %2204  ;;  %2212 = vrcp.f32 %v1311_v58  ;;  %v1315_v6 = vadd.f32 1.0, %v2203_v4 }
 0x245   : > { %v1312_v59 = vadd.f32 1.0, %v2205_v14  ;;  %v2207_v43 = vpop.eup %2206  ;;  %2214 = vrcp.f32 %v1313_v13 }
 0x246   : > { %v2209_v20 = vpop.eup %2208  ;;  %v1316_v16 = vadd.f32 1.0, %v2207_v43  ;;  %v2124_v43 = vld [vmem:[%s2922_s12 + $0x10] sm:$0xff]  }
 0x247   : > { %2216 = vrcp.f32 %v1312_v59  ;;  %v2211_v24 = vpop.eup %2210  ;;  %v1318_v51 = vadd.f32 1.0, %v2209_v20  ;;  %v2123_v59 = vld [vmem:[%s2922_s12 + $0x8] sm:$0xff]   ;;  %v2126_v20 = vld [vmem:[%s2922_s12 + $0x20] sm:$0xff]  }
 0x248   : > { %2218 = vrcp.f32 %v1314_v56  ;;  %v1317_v33 = vadd.f32 1.0, %v2211_v24  ;;  %v2122_v56 = vld [vmem:[%s2922_s12] sm:$0xff]   ;;  %v2128_v24 = vld [vmem:[%s2922_s12 + $0x30] sm:$0xff]  }
 0x249   : > { %2220 = vrcp.f32 %v1315_v6  ;;  %v2125_v6 = vld [vmem:[%s2922_s12 + $0x18] sm:$0xff]  }
 0x24a   : > { %2222 = vrcp.f32 %v1316_v16  ;;  %v2127_v16 = vld [vmem:[%s2922_s12 + $0x28] sm:$0xff]  }
 0x24b   : > { %2224 = vrcp.f32 %v1317_v33  ;;  %v2129_v33 = vld [vmem:[%s2922_s12 + $0x38] sm:$0xff]  }
 0x24c   : > { %2226 = vrcp.f32 %v1318_v51  ;;  %v1473_v51 = vld [vmem:[%s2921_s11] sm:$0x1] }
 0x24e   : > { %v2213_v9 = vpop.eup %2212 }
 0x24f   : > { %v2215_v48 = vpop.eup %2214  ;;  %v2797_v53 = vmul.f32 %v2213_v9, %v2787_v41 }
 0x250   : > { %v2802_v12 = vmul.f32 %v2215_v48, %v2736_v23 }
 0x251   : > { %v2217_v19 = vpop.eup %2216 }
 0x252   : > { %v2799_v49 = vmul.f32 %v2217_v19, %v1280_v17  ;;  %v2219_v61 = vpop.eup %2218 }
 0x253   : > { %v2221_v15 = vpop.eup %2220  ;;  %v2807_v47 = vmul.f32 %v2219_v61, %v2767_v54 }
 0x254   : > { %v1343_v5 = vadd.f32 %v2799_v49, %v2797_v53  ;;  %v2223_v60 = vpop.eup %2222  ;;  %v2811_v2 = vmul.f32 %v2221_v15, %v2770_v63 }
 0x255   : > { %v2225_v17 = vpop.eup %2224  ;;  %v2814_v46 = vmul.f32 %v2223_v60, %v1284_v57 }
 0x256   : > { %v1344_v55 = vadd.f32 %v1343_v5, %v2802_v12  ;;  %v2227_v35 = vpop.eup %2226  ;;  %v2817_v22 = vmul.f32 %v2225_v17, %v1285_v62  ;;  %v1375_v62 = vld [vmem:[%s2919_s9] sm:$0x1] }
 0x257   : > { %v2820_v54 = vmul.f32 %v2227_v35, %v1286_v45  ;;  %v1480_v45 = vsel %vm1478_vm8, %v1472_v0, 0 }
 0x258   : > { %v1345_v41 = vadd.f32 %v1344_v55, %v2807_v47  ;;  %2051 = vmatpush3.bf16.msra.mxu1 %v1480_v45 }
 0x259   : > { %2056 = vmatprep.subr.bf16.mxu1 %v2122_v56 }
 0x25a   : > { %v1346_v23 = vadd.f32 %v1345_v41, %v2811_v2 }
 0x25c   : > { %v1347_v11 = vadd.f32 %v1346_v23, %v2814_v46  ;;  %v2934_v23 = vsub.s32 0, %v2524_v34 }
 0x25e   : > { %v1348_v31 = vadd.f32 %v1347_v11, %v2817_v22 }
 0x260   : > { %v1349_v7 = vadd.f32 %v1348_v31, %v2820_v54 }
 0x262   : > { %v1350_v63 = vrot.slane %v1349_v7, 4 }
 0x264   : > { %v1351_v52 = vadd.f32 %v1350_v63, %v1349_v7 }
 0x266   : > { %v1352_v42 = vrot.slane %v1351_v52, 2 }
 0x268   : > { %v1353_v21 = vadd.f32 %v1352_v42, %v1351_v52 }
 0x26a   : > { %v1354_v30 = vrot.slane %v1353_v21, 1 }
 0x26c   : > { %v1355_v57 = vadd.f32 %v1354_v30, %v1353_v21 }
 0x26e   : > { %v1357_v18 = vmul.f32 0.015625, %v1355_v57 }
 0x270   : > { %v1358_v40 = vpack.c.bf16 %v1357_v18, %v1357_v18 }
 0x272   : > { %2047 = vmatmul.mubr.bf16.vlgmr.msra.gmra.mrb[8].mxu0 %v1358_v40 }
 0x345   : > { %v1458_v44 = vpop.f32.mrb[8].mxu0 }
 0x346   : > { %v1459_v1 = vadd.f32 %v1458_v44, %v1375_v62  ;;  %v2048_v50 = vpop.f32.mrb[9].mxu0 }
 0x347   : > { %v1461_v8 = vpop.f32.mrb[10].mxu0 }
 0x348   : > { %v1464_v32 = vsub.f32 0.0, %v1459_v1  ;;  %v2049_v25 = vpop.f32.mrb[11].mxu0 }
 0x34a   : > { %v1465_v10 = vmul.f32 1.442695, %v1464_v32 }
 0x34c   : > { %2228 = vpow2.f32 %v1465_v10 }
 0x356   : > { %v2229_v3 = vpop.eup %2228 }
 0x357   : > { %v1467_v13 = vadd.f32 1.0, %v2229_v3 }
 0x359   : > { %2230 = vrcp.f32 %v1467_v13 }
 0x363   : > { %v2231_v58 = vpop.eup %2230 }
 0x364   : > { %v1470_v4 = vmul.f32 %v2231_v58, %v1459_v1 }
 0x366   : > { %v1471_v14 = vpack.c.bf16 %v1470_v4, %v1470_v4 }
 0x368   : > { %2053 = vmatmul.mubr.msk.bf16.vlgmr.msra.gmra.mrb[8].mxu1 %vm1474_vm9, %v1471_v14 }
 0x369   : > { %2057 = vmatpush3.bf16.msra.mxu1 %v2122_v56 }
 0x36a   : > { %2058 = vmatprep.subr.bf16.mxu1 %v2123_v59 }
 0x36d   : > { %2059 = vmatpush3.bf16.msra.mxu1 %v2123_v59 }
 0x36e   : > { %2060 = vmatprep.subr.bf16.mxu1 %v2124_v43 }
 0x371   : > { %2061 = vmatpush3.bf16.msra.mxu1 %v2124_v43 }
 0x372   : > { %2062 = vmatprep.subr.bf16.mxu1 %v2125_v6 }
 0x375   : > { %2063 = vmatpush3.bf16.msra.mxu1 %v2125_v6 }
 0x376   : > { %2064 = vmatprep.subr.bf16.mxu1 %v2126_v20 }
 0x379   : > { %2065 = vmatpush3.bf16.msra.mxu1 %v2126_v20  ;;  %v1955_v20 = vld [vmem:[%s2925_s15] ss:$0 sm:$0xff] }
 0x37a   : > { %2066 = vmatprep.subr.bf16.mxu1 %v2127_v16 }
 0x37d   : > { %2067 = vmatpush3.bf16.msra.mxu1 %v2127_v16 }
 0x37e   : > { %2068 = vmatprep.subr.bf16.mxu1 %v2128_v24 }
 0x381   : > { %2069 = vmatpush3.bf16.msra.mxu1 %v2128_v24 }
 0x382   : > { %2070 = vmatprep.subr.bf16.mxu1 %v2129_v33 }
 0x385   : > { %2071 = vmatpush3.bf16.msra.mxu1 %v2129_v33 }
 0x43b   : > { %v1516_v9 = vpop.f32.mrb[8].mxu1 }
 0x43c   : > { %v1517_v48 = vadd.f32 %v1516_v9, %v1473_v51  ;;  %v2054_v19 = vpop.f32.mrb[9].mxu1 }
 0x43d   : > { %v1519_v61 = vpop.f32.mrb[10].mxu1 }
 0x43e   : > { %v1522_v5 = vsub.f32 0.0, %v1517_v48  ;;  %v2055_v15 = vpop.f32.mrb[11].mxu1 }
 0x440   : > { %v1523_v55 = vmul.f32 1.442695, %v1522_v5 }
 0x442   : > { %2232 = vpow2.f32 %v1523_v55 }
 0x44c   : > { %v2233_v60 = vpop.eup %2232 }
 0x44d   : > { %v1525_v41 = vadd.f32 1.0, %v2233_v60 }
 0x44f   : > { %2234 = vrcp.f32 %v1525_v41 }
 0x459   : > { %v2235_v17 = vpop.eup %2234 }
 0x45a   : > { %v1531_v35 = vrot.slane %v2235_v17, %v2934_v23 }
 0x45c   : > { %v1532_v11 = vmul.f32 %v1531_v35, %v2797_v53  ;;  %v1533_v31 = vmul.f32 %v1531_v35, %v2799_v49  ;;  %v1534_v7 = vmul.f32 %v1531_v35, %v2802_v12  ;;  %v1535_v63 = vmul.f32 %v1531_v35, %v2807_v47  ;;  %v2130_v49 = vld [vmem:[%s2924_s14] sm:$0xff]   ;;  %v2131_v12 = vld [vmem:[%s2924_s14 + $0x8] sm:$0xff]  }
 0x45d   : > { %v1536_v52 = vmul.f32 %v1531_v35, %v2811_v2  ;;  %v1537_v42 = vmul.f32 %v1531_v35, %v2814_v46  ;;  %v1538_v34 = vmul.f32 %v1531_v35, %v2817_v22  ;;  %v1539_v53 = vmul.f32 %v1531_v35, %v2820_v54  ;;  %2080 = vmatprep.subr.bf16.mxu0 %v2130_v49  ;;  %v1946_v47 = vld [vmem:[%s2923_s13] ss:$0 sm:$0xff] }
 0x45e   : > { %v1540_v21 = vpack.c.bf16 %v1533_v31, %v1532_v11  ;;  %v1541_v30 = vpack.c.bf16 %v1535_v63, %v1534_v7  ;;  %2081 = vmatpush3.bf16.msra.mxu0 %v2130_v49 }
 0x45f   : > { %v1542_v57 = vpack.c.bf16 %v1537_v42, %v1536_v52  ;;  %v1543_v18 = vpack.c.bf16 %v1539_v53, %v1538_v34  ;;  %2082 = vmatprep.subr.bf16.mxu0 %v2131_v12 }
 0x460   : > { %2072 = vmatprep.mubr.bf16.mxu1 %v1540_v21 }
 0x461   : > { %2073 = vmatmul.mubr.bf16.vlgmr.msra.gmra.mrb[12].mxu1 %v1541_v30 }
 0x462   : > { %2076 = vmatprep.mubr.bf16.mxu1 %v1542_v57  ;;  %2083 = vmatpush3.bf16.msra.mxu0 %v2131_v12 }
 0x469   : > { %2077 = vmatmul.mubr.bf16.gmra.mrb[16].mxu1 %v1543_v18 }
 0x534   : > { %v2074_v2 = vpop.f32.mrb[12].mxu1 }
 0x535   : > { %v1658_v46 = vadd.f32 %v2074_v2, %v1946_v47  ;;  %v1649_v22 = vpop.f32.mrb[13].mxu1 }
 0x536   : > { %v1650_v54 = vadd.f32 %v1946_v47, %v1649_v22  ;;  %v2075_v40 = vpop.f32.mrb[14].mxu1 }
 0x537   : > { %v1661_v0 = vadd.f32 %v2075_v40, %v1946_v47  ;;  %v1652_v45 = vpop.f32.mrb[15].mxu1  ;;  %v1682_v44 = vadd.f32 %v1658_v46, %v2435_v29 }
 0x538   : > { %v1653_v62 = vadd.f32 %v1946_v47, %v1652_v45  ;;  %v1680_v50 = vadd.f32 %v1650_v54, %v2430_v27 }
 0x539   : > { %v1683_v1 = vadd.f32 %v1661_v0, %v2427_v26 }
 0x53a   : > { %v1681_v8 = vadd.f32 %v1653_v62, %v2432_v28 }
 0x53b   : > { %v1689_v32 = vpack.c.bf16 %v1683_v1, %v1682_v44 }
 0x53c   : > { %v1688_v25 = vpack.c.bf16 %v1681_v8, %v1680_v50  ;;  %v2078_v10 = vpop.f32.mrb[16].mxu1 }
 0x53d   : > { %v1674_v3 = vadd.f32 %v2078_v10, %v1946_v47  ;;  %v1665_v13 = vpop.f32.mrb[17].mxu1 }
 0x53e   : > { %v1666_v58 = vadd.f32 %v1946_v47, %v1665_v13  ;;  %v2079_v4 = vpop.f32.mrb[18].mxu1  ;;  %2084 = vmatprep.mubr.msk.bf16.mxu0 %vm737_vm3, %v1688_v25 }
 0x53f   : > { %v1677_v14 = vadd.f32 %v2079_v4, %v1946_v47  ;;  %v1668_v56 = vpop.f32.mrb[19].mxu1  ;;  %2085 = vmatmul.mubr.msk.bf16.vlgmr.msra.gmra.mrb[12].mxu0 %vm737_vm3, %v1689_v32  ;;  %v1686_v26 = vadd.f32 %v1674_v3, %v2450_v39 }
 0x540   : > { %v1669_v29 = vadd.f32 %v1946_v47, %v1668_v56  ;;  %v1684_v28 = vadd.f32 %v1666_v58, %v2445_v37 }
 0x541   : > { %v1687_v27 = vadd.f32 %v1677_v14, %v2443_v36 }
 0x542   : > { %v1685_v59 = vadd.f32 %v1669_v29, %v2447_v38 }
 0x543   : > { %v1691_v43 = vpack.c.bf16 %v1687_v27, %v1686_v26 }
 0x544   : > { %v1690_v6 = vpack.c.bf16 %v1685_v59, %v1684_v28 }
 0x546   : > { %2088 = vmatprep.mubr.msk.bf16.mxu0 %vm737_vm3, %v1690_v6 }
 0x547   : > { %2089 = vmatmul.mubr.msk.bf16.gmra.mrb[16].mxu0 %vm737_vm3, %v1691_v43 }
 0x612   : > { %v2086_v16 = vpop.f32.mrb[12].mxu0 }
 0x613   : > { %v2891_v24 = vadd.f32 %v2086_v16, %v1955_v20  ;;  %v1761_v39 = vpop.f32.mrb[13].mxu0 }
 0x614   : > { %v2893_v33 = vadd.f32 %v1955_v20, %v1761_v39  ;;  %v2087_v36 = vpop.f32.mrb[14].mxu0 }
 0x615   : > { %v1794_v37 = vsub.f32 0.0, %v2891_v24  ;;  %v2896_v38 = vadd.f32 %v2087_v36, %v1955_v20  ;;  %v1764_v51 = vpop.f32.mrb[15].mxu0 }
 0x616   : > { %v1792_v9 = vsub.f32 0.0, %v2893_v33  ;;  %v1765_v48 = vadd.f32 %v1955_v20, %v1764_v51 }
 0x617   : > { %v1804_v19 = vmul.f32 1.442695, %v1794_v37  ;;  %v1795_v61 = vsub.f32 0.0, %v2896_v38 }
 0x618   : > { %v1800_v5 = vmul.f32 1.442695, %v1792_v9  ;;  %v1793_v15 = vsub.f32 0.0, %v1765_v48 }
 0x619   : > { %2236 = vpow2.f32 %v1804_v19  ;;  %v1806_v55 = vmul.f32 1.442695, %v1795_v61 }
 0x61a   : > { %2238 = vpow2.f32 %v1800_v5  ;;  %v1802_v60 = vmul.f32 1.442695, %v1793_v15  ;;  %v2090_v41 = vpop.f32.mrb[16].mxu0 }
 0x61b   : > { %2240 = vpow2.f32 %v1806_v55  ;;  %v1786_v17 = vadd.f32 %v2090_v41, %v1955_v20  ;;  %v1777_v23 = vpop.f32.mrb[17].mxu0 }
 0x61c   : > { %2242 = vpow2.f32 %v1802_v60  ;;  %v1778_v35 = vadd.f32 %v1955_v20, %v1777_v23  ;;  %v2091_v11 = vpop.f32.mrb[18].mxu0 }
 0x61d   : > { %v1798_v31 = vsub.f32 0.0, %v1786_v17  ;;  %v1789_v7 = vadd.f32 %v2091_v11, %v1955_v20  ;;  %v1780_v63 = vpop.f32.mrb[19].mxu0 }
 0x61e   : > { %v1796_v52 = vsub.f32 0.0, %v1778_v35  ;;  %v1781_v42 = vadd.f32 %v1955_v20, %v1780_v63 }
 0x61f   : > { %v1812_v21 = vmul.f32 1.442695, %v1798_v31  ;;  %v1799_v30 = vsub.f32 0.0, %v1789_v7 }
 0x620   : > { %v1808_v57 = vmul.f32 1.442695, %v1796_v52  ;;  %v1797_v34 = vsub.f32 0.0, %v1781_v42 }
 0x621   : > { %2244 = vpow2.f32 %v1812_v21  ;;  %v1814_v53 = vmul.f32 1.442695, %v1799_v30 }
 0x622   : > { %2246 = vpow2.f32 %v1808_v57  ;;  %v1810_v18 = vmul.f32 1.442695, %v1797_v34 }
 0x623   : > { %v2237_v49 = vpop.eup %2236  ;;  %2248 = vpow2.f32 %v1814_v53 }
 0x624   : > { %v2239_v12 = vpop.eup %2238  ;;  %v1818_v47 = vadd.f32 1.0, %v2237_v49  ;;  %2250 = vpow2.f32 %v1810_v18 }
 0x625   : > { %v2241_v2 = vpop.eup %2240  ;;  %v1816_v46 = vadd.f32 1.0, %v2239_v12 }
 0x626   : > { %v2243_v22 = vpop.eup %2242  ;;  %v1819_v54 = vadd.f32 1.0, %v2241_v2 }
 0x627   : > { %2252 = vrcp.f32 %v1816_v46  ;;  %v1817_v40 = vadd.f32 1.0, %v2243_v22 }
 0x628   : > { %2254 = vrcp.f32 %v1818_v47 }
 0x629   : > { %2256 = vrcp.f32 %v1817_v40 }
 0x62a   : > { %2258 = vrcp.f32 %v1819_v54 }
 0x62b   : > { %v2245_v0 = vpop.eup %2244 }
 0x62c   : > { %v2247_v45 = vpop.eup %2246  ;;  %v1822_v62 = vadd.f32 1.0, %v2245_v0 }
 0x62d   : > { %v2249_v44 = vpop.eup %2248  ;;  %v1820_v1 = vadd.f32 1.0, %v2247_v45 }
 0x62e   : > { %v2251_v50 = vpop.eup %2250  ;;  %v1823_v8 = vadd.f32 1.0, %v2249_v44 }
 0x62f   : > { %2260 = vrcp.f32 %v1820_v1  ;;  %v1821_v32 = vadd.f32 1.0, %v2251_v50 }
 0x630   : > { %2262 = vrcp.f32 %v1822_v62 }
 0x631   : > { %v2253_v25 = vpop.eup %2252  ;;  %2264 = vrcp.f32 %v1821_v32 }
 0x632   : > { %v2255_v10 = vpop.eup %2254  ;;  %2266 = vrcp.f32 %v1823_v8  ;;  %v1840_v13 = vmul.f32 %v2253_v25, %v2893_v33 }
 0x633   : > { %v2257_v3 = vpop.eup %2256  ;;  %v1842_v14 = vmul.f32 %v2255_v10, %v2891_v24 }
 0x634   : > { %v1841_v58 = vmul.f32 %v2257_v3, %v1765_v48  ;;  %v2259_v4 = vpop.eup %2258 }
 0x635   : > { %v1843_v29 = vmul.f32 %v2259_v4, %v2896_v38 }
 0x636   : > { %v1848_v56 = vadd.f32 %v1841_v58, %v1840_v13 }
 0x638   : > { %v1849_v26 = vadd.f32 %v1848_v56, %v1842_v14 }
 0x639   : > { %v2261_v27 = vpop.eup %2260 }
 0x63a   : > { %v2263_v28 = vpop.eup %2262  ;;  %v1844_v59 = vmul.f32 %v2261_v27, %v1778_v35  ;;  %v1850_v43 = vadd.f32 %v1849_v26, %v1843_v29 }
 0x63b   : > { %v2265_v6 = vpop.eup %2264  ;;  %v1846_v36 = vmul.f32 %v2263_v28, %v1786_v17 }
 0x63c   : > { %v1851_v20 = vadd.f32 %v1850_v43, %v1844_v59  ;;  %v1845_v16 = vmul.f32 %v2265_v6, %v1781_v42  ;;  %v2267_v39 = vpop.eup %2266 }
 0x63d   : > { %v1847_v33 = vmul.f32 %v2267_v39, %v1789_v7 }
 0x63e   : > { %v1852_v37 = vadd.f32 %v1851_v20, %v1845_v16 }
 0x640   : > { %v1853_v51 = vadd.f32 %v1852_v37, %v1846_v36 }
 0x642   : > { %v1854_v9 = vadd.f32 %v1853_v51, %v1847_v33 }
 0x644   : > { %v1855_v48 = vrot.slane %v1854_v9, 4 }
 0x646   : > { %v1856_v24 = vadd.f32 %v1855_v48, %v1854_v9 }
 0x648   : > { %v1857_v19 = vrot.slane %v1856_v24, 2 }
 0x64a   : > { %v1858_v61 = vadd.f32 %v1857_v19, %v1856_v24 }
 0x64c   : > { %v1859_v38 = vrot.slane %v1858_v61, 1 }
 0x64e   : > { %v1860_v5 = vadd.f32 %v1859_v38, %v1858_v61 }
 0x650   : > { %v1861_v15 = vmul.f32 0.015625, %v1860_v5 }
 0x652   : > { %1862 = vst [vmem:[%s517_s17] sm:$0x1] %v1861_v15 }
 0x653 PF: > { %s26_s21 = sadd.s32 1, %s2274_s21  }
 0x654   : > { %p23_p4 = scmp.ge.s32.totalorder %s26_s21, 4  }
 0x656   :  { %25 = sbr.rel (!%p23_p4) target bundleno = 2 (0x2), region = 114 }

</bundles_post_ra>
